<compile_context>
chip_gen: v7x
topology: tpu7x:2x2x1
jax: 0.10.0
libtpu: 0.0.40
codegen_flags: <defaults>
</compile_context>

<pallas_src>
import jax
import jax.numpy as jnp
from jax import lax
from jax.experimental import pallas as pl
from jax.experimental.pallas import tpu as pltpu

# ---- sizes (small, consistent with the module's forward) ----
B, S, D, H, L = 2, 8, 32, 4, 2        # batch, seq, width, heads, layers
BS = B * S                             # batch folded into sublanes
HD = D // H                            # head dim
MLP = 4 * D                            # transformer MLP hidden
P = 16                                 # text_projection output dim
EPS = 1e-5
NEG_INF = -1e9
DTYPE = jnp.float32                    # clip_model.dtype -> fp32 here

# rows of the packed per-layer vector table (L, 8, D)
_LN1_G, _LN1_B, _BO, _LN2_G, _LN2_B, _B2, _LNF_G, _LNF_B = range(8)


# ---- shared math helpers ----
def _layernorm(x, g, b):
    mu = jnp.mean(x, axis=-1, keepdims=True)
    var = jnp.mean((x - mu) ** 2, axis=-1, keepdims=True)
    return (x - mu) * lax.rsqrt(var + EPS) * g + b


def _softmax_ref(x):                   # reference (pure JAX) softmax
    m = jnp.max(x, axis=-1, keepdims=True)
    e = jnp.exp(x - m)
    return e / jnp.sum(e, axis=-1, keepdims=True)


def _softmax_kernel(x):                # in-kernel softmax: divide -> EUP reciprocal
    m = jnp.max(x, axis=-1, keepdims=True)
    e = jnp.exp(x - m)
    return e * pl.reciprocal(jnp.sum(e, axis=-1, keepdims=True), approx=True)


def _quickgelu(x):
    return x * jax.nn.sigmoid(1.702 * x)


# ============================ fused Pallas kernel ============================

def fused_kernel(
    eot_ref,                               # (B, 1) int32  — EOT row per batch
    x_ref, pos_ref,                        # (BS, D), (BS, D)
    wqkv_ref, bqkv_ref,                    # (1, D, 3D), (1, 1, 3D)   [this layer]
    wo_ref,                                # (1, D, D)
    w1_ref, b1_ref, w2_ref,                # (1, D, MLP), (1, 1, MLP), (1, MLP, D)
    vecs_ref,                              # (1, 8, D) packed LN/bias vectors
    proj_ref,                              # (D, P)
    o_ref,                                 # (B, P)
    x_scr,                                 # VMEM scratch (BS, D): x carried across layers
):
    l = pl.program_id(0)

    # ---- layer 0: positional embedding add, initialize the carried activation ----
    @pl.when(l == 0)
    def _():
        x_scr[...] = x_ref[...] + pos_ref[...]

    x = x_scr[...]                                     # (BS, D)
    v8 = vecs_ref[0]                                   # (8, D) packed vectors

    # ---- block-diagonal causal mask over the folded batch (no int division) ----
    r = lax.broadcasted_iota(jnp.int32, (BS, BS), 0)
    c = lax.broadcasted_iota(jnp.int32, (BS, BS), 1)
    rb = lax.broadcasted_iota(jnp.int32, (B, S, BS), 0).reshape(BS, BS)   # row batch id
    banned = (c > r) | (c < rb * S)                    # causal OR earlier batch block
    mask = jnp.where(banned, NEG_INF, 0.0).astype(jnp.float32)            # (BS, BS)

    # ---- attention sub-block:  x = x + attn(ln_1(x)) ----
    h = _layernorm(x, v8[_LN1_G:_LN1_G + 1], v8[_LN1_B:_LN1_B + 1])       # (BS, D)
    # one fused lane-dense QKV matmul (1/sqrt(HD) pre-folded into Q columns)
    qkv = jnp.dot(h, wqkv_ref[0], preferred_element_type=jnp.float32) + bqkv_ref[0]
    q, k, v = qkv[:, :D], qkv[:, D:2 * D], qkv[:, 2 * D:]                 # (BS, D) each

    def to_heads(t):                                   # (BS, D) -> (H, BS, HD)
        return jnp.stack([t[:, hh * HD:(hh + 1) * HD] for hh in range(H)], axis=0)

    qh, kh, vh = to_heads(q), to_heads(k), to_heads(v)
    s = jnp.einsum('hqd,hkd->hqk', qh, kh,
                   preferred_element_type=jnp.float32) + mask             # (H, BS, BS)
    p_att = _softmax_kernel(s)                         # one softmax, all heads & batches
    ctx = jnp.einsum('hqk,hkd->hqd', p_att, vh,
                     preferred_element_type=jnp.float32)                  # (H, BS, HD)
    ctx2d = jnp.concatenate([ctx[hh] for hh in range(H)], axis=1)         # (BS, D)
    # single lane-dense out-projection (Wo NOT pre-split per head)
    x = x + jnp.dot(ctx2d, wo_ref[0],
                    preferred_element_type=jnp.float32) + v8[_BO:_BO + 1]

    # ---- MLP sub-block:  x = x + mlp(ln_2(x)) ----
    h2 = _layernorm(x, v8[_LN2_G:_LN2_G + 1], v8[_LN2_B:_LN2_B + 1])
    m = jnp.dot(h2, w1_ref[0], preferred_element_type=jnp.float32) + b1_ref[0]
    m = _quickgelu(m)
    x = x + jnp.dot(m, w2_ref[0], preferred_element_type=jnp.float32) + v8[_B2:_B2 + 1]

    x_scr[...] = x                                     # carry to next layer

    # ---- last layer: EOT gather (one-hot matmul), ln_final, text projection ----
    @pl.when(l == pl.num_programs(0) - 1)
    def _():
        eot = eot_ref[...]                                                # (B, 1) int32
        tgt = eot + lax.broadcasted_iota(jnp.int32, (B, 1), 0) * S        # folded row idx
        col = lax.broadcasted_iota(jnp.int32, (B, BS), 1)
        onehot = (col == tgt).astype(jnp.float32)                         # (B, BS)
        x_eot = jnp.dot(onehot, x, preferred_element_type=jnp.float32)    # (B, D)
        xn = _layernorm(x_eot, v8[_LNF_G:_LNF_G + 1], v8[_LNF_B:_LNF_B + 1])
        o_ref[...] = jnp.dot(xn, proj_ref[...], preferred_element_type=jnp.float32)


# ============================ parameter prep ============================

def prepare_fused_params(params):
    """Stack per-layer weights along L and pack small vectors into one table.

    One-time layout prep in plain JAX.  The 1/sqrt(HD) attention scale is
    folded into the Q columns of Wqkv / bqkv here.
    """
    scale = HD ** -0.5
    wqkv_l, bqkv_l, wo_l, w1_l, b1_l, w2_l, vecs_l = [], [], [], [], [], [], []
    lnf_g, lnf_b = params["lnf_g"], params["lnf_b"]
    for p in params["layers"]:
        wqkv = jnp.concatenate([p["wqkv_t"][:, :D] * scale, p["wqkv_t"][:, D:]], axis=1)
        bqkv = jnp.concatenate([p["bqkv"][:, :D] * scale, p["bqkv"][:, D:]], axis=1)
        wqkv_l.append(wqkv)                       # (D, 3D)
        bqkv_l.append(bqkv)                       # (1, 3D)
        wo_l.append(p["wo_t"])                    # (D, D)
        w1_l.append(p["w1_t"])                    # (D, MLP)
        b1_l.append(p["b1"])                      # (1, MLP)
        w2_l.append(p["w2_t"])                    # (MLP, D)
        vecs_l.append(jnp.concatenate(            # (8, D)
            [p["ln1_g"], p["ln1_b"], p["bo"], p["ln2_g"], p["ln2_b"], p["b2"],
             lnf_g, lnf_b], axis=0))
    return dict(
        wqkv=jnp.stack(wqkv_l), bqkv=jnp.stack(bqkv_l), wo=jnp.stack(wo_l),
        w1=jnp.stack(w1_l), b1=jnp.stack(b1_l), w2=jnp.stack(w2_l),
        vecs=jnp.stack(vecs_l), proj=params["text_proj"])


# ============================ wrapper ============================

def text_encoder_forward(prompts, tokenized_prompts, params):
    fw = prepare_fused_params(params)
    eot = jnp.argmax(tokenized_prompts, axis=-1).astype(jnp.int32).reshape(B, 1)
    x_in = prompts.reshape(BS, D)                         # fold batch into sublanes
    pos_tiled = jnp.tile(params["pos_emb"], (B, 1))       # (BS, D) layout prep

    in_specs = [
        pl.BlockSpec((B, 1), lambda l: (0, 0)),           # eot
        pl.BlockSpec((BS, D), lambda l: (0, 0)),          # x (prompts, folded)
        pl.BlockSpec((BS, D), lambda l: (0, 0)),          # positional embedding (tiled)
        pl.BlockSpec((1, D, 3 * D), lambda l: (l, 0, 0)),  # wqkv   (streamed per layer)
        pl.BlockSpec((1, 1, 3 * D), lambda l: (l, 0, 0)),  # bqkv
        pl.BlockSpec((1, D, D), lambda l: (l, 0, 0)),      # wo
        pl.BlockSpec((1, D, MLP), lambda l: (l, 0, 0)),    # w1
        pl.BlockSpec((1, 1, MLP), lambda l: (l, 0, 0)),    # b1
        pl.BlockSpec((1, MLP, D), lambda l: (l, 0, 0)),    # w2
        pl.BlockSpec((1, 8, D), lambda l: (l, 0, 0)),      # packed LN/bias vectors
        pl.BlockSpec((D, P), lambda l: (0, 0)),            # text projection
    ]

    grid_spec = pltpu.PrefetchScalarGridSpec(
        num_scalar_prefetch=0,
        grid=(L,),                                         # stream weights layer by layer
        in_specs=in_specs,
        out_specs=pl.BlockSpec((B, P), lambda l: (0, 0)),  # resident output
        scratch_shapes=[pltpu.VMEM((BS, D), DTYPE)],       # activation carried across L
    )

    out = pl.pallas_call(
        fused_kernel,
        out_shape=jax.ShapeDtypeStruct((B, P), DTYPE),
        grid_spec=grid_spec,
        compiler_params=pltpu.CompilerParams(
            dimension_semantics=("arbitrary",)),           # L axis carries state
    )(eot, x_in, pos_tiled, fw["wqkv"], fw["bqkv"], fw["wo"],
      fw["w1"], fw["b1"], fw["w2"], fw["vecs"], fw["proj"])
    return out                                             # (B, P)


# ============================ parameters ============================

def init_params(key):
    """Deterministic synthetic parameters. Weights stored pre-transposed (in, out)."""
    def nrm(k, shape, scale=0.05):
        return (jax.random.normal(k, shape, dtype=jnp.float32) * scale).astype(DTYPE)

    keys = iter(jax.random.split(key, 8 + 10 * L))
    layers = []
    for _ in range(L):
        layers.append(dict(
            ln1_g=jnp.ones((1, D), DTYPE), ln1_b=jnp.zeros((1, D), DTYPE),
            wqkv_t=nrm(next(keys), (D, 3 * D)), bqkv=nrm(next(keys), (1, 3 * D)),
            wo_t=nrm(next(keys), (D, D)), bo=nrm(next(keys), (1, D)),
            ln2_g=jnp.ones((1, D), DTYPE), ln2_b=jnp.zeros((1, D), DTYPE),
            w1_t=nrm(next(keys), (D, MLP)), b1=nrm(next(keys), (1, MLP)),
            w2_t=nrm(next(keys), (MLP, D)), b2=nrm(next(keys), (1, D)),
        ))
    return dict(
        layers=layers,
        pos_emb=nrm(next(keys), (S, D), scale=0.1),
        lnf_g=jnp.ones((1, D), DTYPE), lnf_b=jnp.zeros((1, D), DTYPE),
        text_proj=nrm(next(keys), (D, P)),
    )


# ============================ pure-JAX reference ============================

def reference_forward(prompts, tokenized_prompts, params):
    x = prompts + params["pos_emb"][None]
    mask = jnp.where(jnp.arange(S)[None, :] > jnp.arange(S)[:, None], NEG_INF, 0.0)
    for p in params["layers"]:
        h = _layernorm(x, p["ln1_g"], p["ln1_b"])
        qkv = h @ p["wqkv_t"] + p["bqkv"]
        q, k, v = qkv[..., :D], qkv[..., D:2 * D], qkv[..., 2 * D:]
        sh = lambda t: t.reshape(B, S, H, HD).transpose(0, 2, 1, 3)
        q, k, v = sh(q) * (HD ** -0.5), sh(k), sh(v)
        s = q @ k.transpose(0, 1, 3, 2) + mask
        a = (_softmax_ref(s) @ v).transpose(0, 2, 1, 3).reshape(B, S, D)
        x = x + a @ p["wo_t"] + p["bo"]
        h2 = _layernorm(x, p["ln2_g"], p["ln2_b"])
        x = x + _quickgelu(h2 @ p["w1_t"] + p["b1"]) @ p["w2_t"] + p["b2"]
    x = _layernorm(x, params["lnf_g"], params["lnf_b"])
    eot = jnp.argmax(tokenized_prompts, axis=-1)
    return x[jnp.arange(B), eot] @ params["text_proj"]


# ============================ main ============================

if __name__ == "__main__":
    key = jax.random.PRNGKey(0)
    k_prompts, k_tok, k_params = jax.random.split(key, 3)

    prompts = jax.random.normal(k_prompts, (B, S, D), dtype=DTYPE) * 0.1
    tokenized_prompts = jax.random.randint(k_tok, (B, S), 1, 1000)
    params = init_params(k_params)

    out = text_encoder_forward(prompts, tokenized_prompts, params)
    out = jax.block_until_ready(out)

    ref = reference_forward(prompts, tokenized_prompts, params)
    assert out.shape == (B, P), out.shape
    assert jnp.allclose(out, ref, atol=1e-3, rtol=1e-3), (out, ref)

    print("KERNEL_OK")
</pallas_src>

<mosaic_0001>
module attributes {stable_mosaic.version = 11 : i64} {
  func.func @fused_kernel(%arg0: i32, %arg1: memref<2x1xi32, #tpu.memory_space<vmem>>, %arg2: memref<16x32xf32, #tpu.memory_space<vmem>>, %arg3: memref<16x32xf32, #tpu.memory_space<vmem>>, %arg4: memref<1x32x96xf32, #tpu.memory_space<vmem>>, %arg5: memref<1x1x96xf32, #tpu.memory_space<vmem>>, %arg6: memref<1x32x32xf32, #tpu.memory_space<vmem>>, %arg7: memref<1x32x128xf32, #tpu.memory_space<vmem>>, %arg8: memref<1x1x128xf32, #tpu.memory_space<vmem>>, %arg9: memref<1x128x32xf32, #tpu.memory_space<vmem>>, %arg10: memref<1x8x32xf32, #tpu.memory_space<vmem>>, %arg11: memref<32x16xf32, #tpu.memory_space<vmem>>, %arg12: memref<2x16xf32, #tpu.memory_space<vmem>>, %arg13: memref<16x32xf32, #tpu.memory_space<vmem>>) attributes {dimension_semantics = [#tpu.dimension_semantics<arbitrary>], iteration_bounds = array<i64: 2>, scalar_prefetch = 0 : i64, scratch_operands = 1 : i64, tpu.core_type = #tpu.core_type<tc>, window_params = [{pipeline_mode = #tpu.pipeline_mode<synchronous>, transform_indices = @transform_0, window_bounds = array<i64: 2, 1>}, {pipeline_mode = #tpu.pipeline_mode<synchronous>, transform_indices = @transform_1, window_bounds = array<i64: 16, 32>}, {pipeline_mode = #tpu.pipeline_mode<synchronous>, transform_indices = @transform_2, window_bounds = array<i64: 16, 32>}, {transform_indices = @transform_3, window_bounds = array<i64: 1, 32, 96>}, {transform_indices = @transform_4, window_bounds = array<i64: 1, 1, 96>}, {transform_indices = @transform_5, window_bounds = array<i64: 1, 32, 32>}, {transform_indices = @transform_6, window_bounds = array<i64: 1, 32, 128>}, {transform_indices = @transform_7, window_bounds = array<i64: 1, 1, 128>}, {transform_indices = @transform_8, window_bounds = array<i64: 1, 128, 32>}, {transform_indices = @transform_9, window_bounds = array<i64: 1, 8, 32>}, {pipeline_mode = #tpu.pipeline_mode<synchronous>, transform_indices = @transform_10, window_bounds = array<i64: 32, 16>}, {pipeline_mode = #tpu.pipeline_mode<synchronous>, transform_indices = @transform_11, window_bounds = array<i64: 2, 16>}]} {
    %c0_i32 = arith.constant 0 : i32
    %0 = arith.cmpi eq, %arg0, %c0_i32 : i32
    %1 = arith.extui %0 : i1 to i32
    %c0_i32_0 = arith.constant 0 : i32
    %2 = arith.cmpi ne, %1, %c0_i32_0 : i32
    scf.if %2 {
      %c0_47 = arith.constant 0 : index
      %c0_48 = arith.constant 0 : index
      %160 = vector.load %arg2[%c0_47, %c0_48] : memref<16x32xf32, #tpu.memory_space<vmem>>, vector<16x32xf32>
      %c0_49 = arith.constant 0 : index
      %c0_50 = arith.constant 0 : index
      %161 = vector.load %arg3[%c0_49, %c0_50] : memref<16x32xf32, #tpu.memory_space<vmem>>, vector<16x32xf32>
      %162 = arith.addf %160, %161 : vector<16x32xf32>
      %c0_51 = arith.constant 0 : index
      %c0_52 = arith.constant 0 : index
      %163 = vector.load %arg13[%c0_51, %c0_52] : memref<16x32xf32, #tpu.memory_space<vmem>>, vector<16x32xf32>
      tpu.vector_store %arg13[%c0_51, %c0_52], %162 {strides = array<i32>} : memref<16x32xf32, #tpu.memory_space<vmem>>, vector<16x32xf32>,
    } else {
    }
    %c0 = arith.constant 0 : index
    %c0_1 = arith.constant 0 : index
    %3 = vector.load %arg13[%c0, %c0_1] : memref<16x32xf32, #tpu.memory_space<vmem>>, vector<16x32xf32>
    %c0_2 = arith.constant 0 : index
    %c0_3 = arith.constant 0 : index
    %c0_4 = arith.constant 0 : index
    %4 = vector.load %arg10[%c0_2, %c0_3, %c0_4] : memref<1x8x32xf32, #tpu.memory_space<vmem>>, vector<1x8x32xf32>
    %5 = vector.shape_cast %4 : vector<1x8x32xf32> to vector<8x32xf32>
    %6 = tpu.iota {dimensions = array<i32: 0>} : vector<16x16xi32>
    %7 = tpu.iota {dimensions = array<i32: 1>} : vector<16x16xi32>
    %8 = tpu.iota {dimensions = array<i32: 0>} : vector<2x8x16xi32>
    %9 = vector.shape_cast %8 : vector<2x8x16xi32> to vector<16x16xi32>
    %10 = arith.cmpi sgt, %7, %6 : vector<16x16xi32>
    %c8_i32 = arith.constant 8 : i32
    %11 = vector.broadcast %c8_i32 : i32 to vector<16x16xi32>
    %12 = arith.muli %9, %11 : vector<16x16xi32>
    %13 = arith.cmpi slt, %7, %12 : vector<16x16xi32>
    %14 = arith.ori %10, %13 : vector<16x16xi1>
    %cst = arith.constant -1.000000e+09 : f32
    %cst_5 = arith.constant 0.000000e+00 : f32
    %15 = vector.broadcast %cst : f32 to vector<16x16xf32>
    %16 = vector.broadcast %cst_5 : f32 to vector<16x16xf32>
    %17 = arith.select %14, %15, %16 : vector<16x16xi1>, vector<16x16xf32>
    %18 = vector.extract_strided_slice %5 {offsets = [0, 0], sizes = [1, 32], strides = [1, 1]} : vector<8x32xf32> to vector<1x32xf32>
    %19 = vector.extract_strided_slice %5 {offsets = [1, 0], sizes = [1, 32], strides = [1, 1]} : vector<8x32xf32> to vector<1x32xf32>
    %cst_6 = arith.constant dense<0.000000e+00> : vector<16xf32>
    %20 = vector.multi_reduction <add>, %3, %cst_6 [1] : vector<16x32xf32> to vector<16xf32>
    %21 = vector.shape_cast %20 : vector<16xf32> to vector<16x1xf32>
    %cst_7 = arith.constant 3.200000e+01 : f32
    %22 = vector.broadcast %cst_7 : f32 to vector<16x1xf32>
    %23 = arith.divf %21, %22 : vector<16x1xf32>
    %24 = vector.broadcast %23 : vector<16x1xf32> to vector<16x32xf32>
    %25 = arith.subf %3, %24 : vector<16x32xf32>
    %26 = arith.mulf %25, %25 : vector<16x32xf32>
    %cst_8 = arith.constant dense<0.000000e+00> : vector<16xf32>
    %27 = vector.multi_reduction <add>, %26, %cst_8 [1] : vector<16x32xf32> to vector<16xf32>
    %28 = vector.shape_cast %27 : vector<16xf32> to vector<16x1xf32>
    %cst_9 = arith.constant 3.200000e+01 : f32
    %29 = vector.broadcast %cst_9 : f32 to vector<16x1xf32>
    %30 = arith.divf %28, %29 : vector<16x1xf32>
    %31 = vector.broadcast %23 : vector<16x1xf32> to vector<16x32xf32>
    %32 = arith.subf %3, %31 : vector<16x32xf32>
    %cst_10 = arith.constant 9.99999974E-6 : f32
    %33 = vector.broadcast %cst_10 : f32 to vector<16x1xf32>
    %34 = arith.addf %30, %33 : vector<16x1xf32>
    %35 = math.rsqrt %34 : vector<16x1xf32>
    %36 = vector.broadcast %35 : vector<16x1xf32> to vector<16x32xf32>
    %37 = arith.mulf %32, %36 : vector<16x32xf32>
    %38 = vector.broadcast %18 : vector<1x32xf32> to vector<16x32xf32>
    %39 = arith.mulf %37, %38 : vector<16x32xf32>
    %40 = vector.broadcast %19 : vector<1x32xf32> to vector<16x32xf32>
    %41 = arith.addf %39, %40 : vector<16x32xf32>
    %c0_11 = arith.constant 0 : index
    %c0_12 = arith.constant 0 : index
    %c0_13 = arith.constant 0 : index
    %42 = vector.load %arg4[%c0_11, %c0_12, %c0_13] : memref<1x32x96xf32, #tpu.memory_space<vmem>>, vector<1x32x96xf32>
    %43 = vector.shape_cast %42 : vector<1x32x96xf32> to vector<32x96xf32>
    %cst_14 = arith.constant dense<0.000000e+00> : vector<16x96xf32>
    %44 = tpu.matmul %41, %43, %cst_14 {dimension_numbers = #tpu.dot_dimension_numbers<[1], [0], [0], [1], [0, 0, 1, 1], [], []>} : vector<16x32xf32>, vector<32x96xf32>, vector<16x96xf32> -> vector<16x96xf32>
    %c0_15 = arith.constant 0 : index
    %c0_16 = arith.constant 0 : index
    %c0_17 = arith.constant 0 : index
    %45 = vector.load %arg5[%c0_15, %c0_16, %c0_17] : memref<1x1x96xf32, #tpu.memory_space<vmem>>, vector<1x1x96xf32>
    %46 = vector.shape_cast %45 : vector<1x1x96xf32> to vector<1x96xf32>
    %47 = vector.broadcast %46 : vector<1x96xf32> to vector<16x96xf32>
    %48 = arith.addf %44, %47 : vector<16x96xf32>
    %49 = vector.extract_strided_slice %48 {offsets = [0, 0], sizes = [16, 32], strides = [1, 1]} : vector<16x96xf32> to vector<16x32xf32>
    %50 = vector.extract_strided_slice %48 {offsets = [0, 32], sizes = [16, 32], strides = [1, 1]} : vector<16x96xf32> to vector<16x32xf32>
    %51 = vector.extract_strided_slice %48 {offsets = [0, 64], sizes = [16, 32], strides = [1, 1]} : vector<16x96xf32> to vector<16x32xf32>
    %52 = vector.extract_strided_slice %49 {offsets = [0, 0], sizes = [16, 8], strides = [1, 1]} : vector<16x32xf32> to vector<16x8xf32>
    %53 = vector.extract_strided_slice %49 {offsets = [0, 8], sizes = [16, 8], strides = [1, 1]} : vector<16x32xf32> to vector<16x8xf32>
    %54 = vector.extract_strided_slice %49 {offsets = [0, 16], sizes = [16, 8], strides = [1, 1]} : vector<16x32xf32> to vector<16x8xf32>
    %55 = vector.extract_strided_slice %49 {offsets = [0, 24], sizes = [16, 8], strides = [1, 1]} : vector<16x32xf32> to vector<16x8xf32>
    %56 = vector.shape_cast %52 : vector<16x8xf32> to vector<1x16x8xf32>
    %57 = vector.shape_cast %53 : vector<16x8xf32> to vector<1x16x8xf32>
    %58 = vector.shape_cast %54 : vector<16x8xf32> to vector<1x16x8xf32>
    %59 = vector.shape_cast %55 : vector<16x8xf32> to vector<1x16x8xf32>
    %60 = tpu.concatenate %56, %57, %58, %59 in 0 : vector<1x16x8xf32>, vector<1x16x8xf32>, vector<1x16x8xf32>, vector<1x16x8xf32> -> vector<4x16x8xf32>
    %61 = vector.extract_strided_slice %50 {offsets = [0, 0], sizes = [16, 8], strides = [1, 1]} : vector<16x32xf32> to vector<16x8xf32>
    %62 = vector.extract_strided_slice %50 {offsets = [0, 8], sizes = [16, 8], strides = [1, 1]} : vector<16x32xf32> to vector<16x8xf32>
    %63 = vector.extract_strided_slice %50 {offsets = [0, 16], sizes = [16, 8], strides = [1, 1]} : vector<16x32xf32> to vector<16x8xf32>
    %64 = vector.extract_strided_slice %50 {offsets = [0, 24], sizes = [16, 8], strides = [1, 1]} : vector<16x32xf32> to vector<16x8xf32>
    %65 = vector.shape_cast %61 : vector<16x8xf32> to vector<1x16x8xf32>
    %66 = vector.shape_cast %62 : vector<16x8xf32> to vector<1x16x8xf32>
    %67 = vector.shape_cast %63 : vector<16x8xf32> to vector<1x16x8xf32>
    %68 = vector.shape_cast %64 : vector<16x8xf32> to vector<1x16x8xf32>
    %69 = tpu.concatenate %65, %66, %67, %68 in 0 : vector<1x16x8xf32>, vector<1x16x8xf32>, vector<1x16x8xf32>, vector<1x16x8xf32> -> vector<4x16x8xf32>
    %70 = vector.extract_strided_slice %51 {offsets = [0, 0], sizes = [16, 8], strides = [1, 1]} : vector<16x32xf32> to vector<16x8xf32>
    %71 = vector.extract_strided_slice %51 {offsets = [0, 8], sizes = [16, 8], strides = [1, 1]} : vector<16x32xf32> to vector<16x8xf32>
    %72 = vector.extract_strided_slice %51 {offsets = [0, 16], sizes = [16, 8], strides = [1, 1]} : vector<16x32xf32> to vector<16x8xf32>
    %73 = vector.extract_strided_slice %51 {offsets = [0, 24], sizes = [16, 8], strides = [1, 1]} : vector<16x32xf32> to vector<16x8xf32>
    %74 = vector.shape_cast %70 : vector<16x8xf32> to vector<1x16x8xf32>
    %75 = vector.shape_cast %71 : vector<16x8xf32> to vector<1x16x8xf32>
    %76 = vector.shape_cast %72 : vector<16x8xf32> to vector<1x16x8xf32>
    %77 = vector.shape_cast %73 : vector<16x8xf32> to vector<1x16x8xf32>
    %78 = tpu.concatenate %74, %75, %76, %77 in 0 : vector<1x16x8xf32>, vector<1x16x8xf32>, vector<1x16x8xf32>, vector<1x16x8xf32> -> vector<4x16x8xf32>
    "tpu.trace_start"() <{level = 10 : i32, message = "hqd,hkd->hqk"}> : () -> ()
    %cst_18 = arith.constant dense<0.000000e+00> : vector<4x16x16xf32>
    %79 = tpu.matmul %60, %69, %cst_18 {dimension_numbers = #tpu.dot_dimension_numbers<[2], [2], [1], [1], [0, 0, 0, 1, 1, 1], [0], [0]>} : vector<4x16x8xf32>, vector<4x16x8xf32>, vector<4x16x16xf32> -> vector<4x16x16xf32>
    "tpu.trace_stop"() : () -> ()
    %80 = vector.shape_cast %17 : vector<16x16xf32> to vector<1x16x16xf32>
    %81 = vector.broadcast %80 : vector<1x16x16xf32> to vector<4x16x16xf32>
    %82 = arith.addf %79, %81 : vector<4x16x16xf32>
    %cst_19 = arith.constant dense<0xFF800000> : vector<4x16xf32>
    %83 = vector.multi_reduction <maximumf>, %82, %cst_19 [2] : vector<4x16x16xf32> to vector<4x16xf32>
    %84 = vector.shape_cast %83 : vector<4x16xf32> to vector<4x16x1xf32>
    %85 = vector.broadcast %84 : vector<4x16x1xf32> to vector<4x16x16xf32>
    %86 = arith.subf %82, %85 : vector<4x16x16xf32>
    %87 = math.exp %86 : vector<4x16x16xf32>
    %cst_20 = arith.constant dense<0.000000e+00> : vector<4x16xf32>
    %88 = vector.multi_reduction <add>, %87, %cst_20 [2] : vector<4x16x16xf32> to vector<4x16xf32>
    %89 = vector.shape_cast %88 : vector<4x16xf32> to vector<4x16x1xf32>
    %90 = tpu.reciprocal %89 {approx = true} : vector<4x16x1xf32> -> vector<4x16x1xf32>
    %91 = vector.broadcast %90 : vector<4x16x1xf32> to vector<4x16x16xf32>
    %92 = arith.mulf %87, %91 : vector<4x16x16xf32>
    "tpu.trace_start"() <{level = 10 : i32, message = "hqk,hkd->hqd"}> : () -> ()
    %cst_21 = arith.constant dense<0.000000e+00> : vector<4x16x8xf32>
    %93 = tpu.matmul %92, %78, %cst_21 {dimension_numbers = #tpu.dot_dimension_numbers<[2], [1], [1], [2], [0, 0, 0, 1, 1, 2], [0], [0]>} : vector<4x16x16xf32>, vector<4x16x8xf32>, vector<4x16x8xf32> -> vector<4x16x8xf32>
    "tpu.trace_stop"() : () -> ()
    %94 = vector.extract_strided_slice %93 {offsets = [0, 0, 0], sizes = [1, 16, 8], strides = [1, 1, 1]} : vector<4x16x8xf32> to vector<1x16x8xf32>
    %95 = vector.shape_cast %94 : vector<1x16x8xf32> to vector<16x8xf32>
    %96 = vector.extract_strided_slice %93 {offsets = [1, 0, 0], sizes = [1, 16, 8], strides = [1, 1, 1]} : vector<4x16x8xf32> to vector<1x16x8xf32>
    %97 = vector.shape_cast %96 : vector<1x16x8xf32> to vector<16x8xf32>
    %98 = vector.extract_strided_slice %93 {offsets = [2, 0, 0], sizes = [1, 16, 8], strides = [1, 1, 1]} : vector<4x16x8xf32> to vector<1x16x8xf32>
    %99 = vector.shape_cast %98 : vector<1x16x8xf32> to vector<16x8xf32>
    %100 = vector.extract_strided_slice %93 {offsets = [3, 0, 0], sizes = [1, 16, 8], strides = [1, 1, 1]} : vector<4x16x8xf32> to vector<1x16x8xf32>
    %101 = vector.shape_cast %100 : vector<1x16x8xf32> to vector<16x8xf32>
    %102 = tpu.concatenate %95, %97, %99, %101 in 1 : vector<16x8xf32>, vector<16x8xf32>, vector<16x8xf32>, vector<16x8xf32> -> vector<16x32xf32>
    %c0_22 = arith.constant 0 : index
    %c0_23 = arith.constant 0 : index
    %c0_24 = arith.constant 0 : index
    %103 = vector.load %arg6[%c0_22, %c0_23, %c0_24] : memref<1x32x32xf32, #tpu.memory_space<vmem>>, vector<1x32x32xf32>
    %104 = vector.shape_cast %103 : vector<1x32x32xf32> to vector<32x32xf32>
    %cst_25 = arith.constant dense<0.000000e+00> : vector<16x32xf32>
    %105 = tpu.matmul %102, %104, %cst_25 {dimension_numbers = #tpu.dot_dimension_numbers<[1], [0], [0], [1], [0, 0, 1, 1], [], []>} : vector<16x32xf32>, vector<32x32xf32>, vector<16x32xf32> -> vector<16x32xf32>
    %106 = arith.addf %3, %105 : vector<16x32xf32>
    %107 = vector.extract_strided_slice %5 {offsets = [2, 0], sizes = [1, 32], strides = [1, 1]} : vector<8x32xf32> to vector<1x32xf32>
    %108 = vector.broadcast %107 : vector<1x32xf32> to vector<16x32xf32>
    %109 = arith.addf %106, %108 : vector<16x32xf32>
    %110 = vector.extract_strided_slice %5 {offsets = [3, 0], sizes = [1, 32], strides = [1, 1]} : vector<8x32xf32> to vector<1x32xf32>
    %111 = vector.extract_strided_slice %5 {offsets = [4, 0], sizes = [1, 32], strides = [1, 1]} : vector<8x32xf32> to vector<1x32xf32>
    %cst_26 = arith.constant dense<0.000000e+00> : vector<16xf32>
    %112 = vector.multi_reduction <add>, %109, %cst_26 [1] : vector<16x32xf32> to vector<16xf32>
    %113 = vector.shape_cast %112 : vector<16xf32> to vector<16x1xf32>
    %cst_27 = arith.constant 3.200000e+01 : f32
    %114 = vector.broadcast %cst_27 : f32 to vector<16x1xf32>
    %115 = arith.divf %113, %114 : vector<16x1xf32>
    %116 = vector.broadcast %115 : vector<16x1xf32> to vector<16x32xf32>
    %117 = arith.subf %109, %116 : vector<16x32xf32>
    %118 = arith.mulf %117, %117 : vector<16x32xf32>
    %cst_28 = arith.constant dense<0.000000e+00> : vector<16xf32>
    %119 = vector.multi_reduction <add>, %118, %cst_28 [1] : vector<16x32xf32> to vector<16xf32>
    %120 = vector.shape_cast %119 : vector<16xf32> to vector<16x1xf32>
    %cst_29 = arith.constant 3.200000e+01 : f32
    %121 = vector.broadcast %cst_29 : f32 to vector<16x1xf32>
    %122 = arith.divf %120, %121 : vector<16x1xf32>
    %123 = vector.broadcast %115 : vector<16x1xf32> to vector<16x32xf32>
    %124 = arith.subf %109, %123 : vector<16x32xf32>
    %cst_30 = arith.constant 9.99999974E-6 : f32
    %125 = vector.broadcast %cst_30 : f32 to vector<16x1xf32>
    %126 = arith.addf %122, %125 : vector<16x1xf32>
    %127 = math.rsqrt %126 : vector<16x1xf32>
    %128 = vector.broadcast %127 : vector<16x1xf32> to vector<16x32xf32>
    %129 = arith.mulf %124, %128 : vector<16x32xf32>
    %130 = vector.broadcast %110 : vector<1x32xf32> to vector<16x32xf32>
    %131 = arith.mulf %129, %130 : vector<16x32xf32>
    %132 = vector.broadcast %111 : vector<1x32xf32> to vector<16x32xf32>
    %133 = arith.addf %131, %132 : vector<16x32xf32>
    %c0_31 = arith.constant 0 : index
    %c0_32 = arith.constant 0 : index
    %c0_33 = arith.constant 0 : index
    %134 = vector.load %arg7[%c0_31, %c0_32, %c0_33] : memref<1x32x128xf32, #tpu.memory_space<vmem>>, vector<1x32x128xf32>
    %135 = vector.shape_cast %134 : vector<1x32x128xf32> to vector<32x128xf32>
    %cst_34 = arith.constant dense<0.000000e+00> : vector<16x128xf32>
    %136 = tpu.matmul %133, %135, %cst_34 {dimension_numbers = #tpu.dot_dimension_numbers<[1], [0], [0], [1], [0, 0, 1, 1], [], []>} : vector<16x32xf32>, vector<32x128xf32>, vector<16x128xf32> -> vector<16x128xf32>
    %c0_35 = arith.constant 0 : index
    %c0_36 = arith.constant 0 : index
    %c0_37 = arith.constant 0 : index
    %137 = vector.load %arg8[%c0_35, %c0_36, %c0_37] : memref<1x1x128xf32, #tpu.memory_space<vmem>>, vector<1x1x128xf32>
    %138 = vector.shape_cast %137 : vector<1x1x128xf32> to vector<1x128xf32>
    %139 = vector.broadcast %138 : vector<1x128xf32> to vector<16x128xf32>
    %140 = arith.addf %136, %139 : vector<16x128xf32>
    %cst_38 = arith.constant 1.702000e+00 : f32
    %141 = vector.broadcast %cst_38 : f32 to vector<16x128xf32>
    %142 = arith.mulf %141, %140 : vector<16x128xf32>
    %143 = arith.negf %142 : vector<16x128xf32>
    %144 = math.exp %143 : vector<16x128xf32>
    %cst_39 = arith.constant 1.000000e+00 : f32
    %145 = vector.broadcast %cst_39 : f32 to vector<16x128xf32>
    %146 = arith.addf %145, %144 : vector<16x128xf32>
    %147 = arith.divf %145, %146 : vector<16x128xf32>
    %148 = arith.mulf %140, %147 : vector<16x128xf32>
    %c0_40 = arith.constant 0 : index
    %c0_41 = arith.constant 0 : index
    %c0_42 = arith.constant 0 : index
    %149 = vector.load %arg9[%c0_40, %c0_41, %c0_42] : memref<1x128x32xf32, #tpu.memory_space<vmem>>, vector<1x128x32xf32>
    %150 = vector.shape_cast %149 : vector<1x128x32xf32> to vector<128x32xf32>
    %cst_43 = arith.constant dense<0.000000e+00> : vector<16x32xf32>
    %151 = tpu.matmul %148, %150, %cst_43 {dimension_numbers = #tpu.dot_dimension_numbers<[1], [0], [0], [1], [0, 0, 1, 1], [], []>} : vector<16x128xf32>, vector<128x32xf32>, vector<16x32xf32> -> vector<16x32xf32>
    %152 = arith.addf %109, %151 : vector<16x32xf32>
    %153 = vector.extract_strided_slice %5 {offsets = [5, 0], sizes = [1, 32], strides = [1, 1]} : vector<8x32xf32> to vector<1x32xf32>
    %154 = vector.broadcast %153 : vector<1x32xf32> to vector<16x32xf32>
    %155 = arith.addf %152, %154 : vector<16x32xf32>
    %c0_44 = arith.constant 0 : index
    %c0_45 = arith.constant 0 : index
    %156 = vector.load %arg13[%c0_44, %c0_45] : memref<16x32xf32, #tpu.memory_space<vmem>>, vector<16x32xf32>
    tpu.vector_store %arg13[%c0_44, %c0_45], %155 {strides = array<i32>} : memref<16x32xf32, #tpu.memory_space<vmem>>, vector<16x32xf32>,
    %c1_i32 = arith.constant 1 : i32
    %157 = arith.cmpi eq, %arg0, %c1_i32 : i32
    %158 = arith.extui %157 : i1 to i32
    %c0_i32_46 = arith.constant 0 : i32
    %159 = arith.cmpi ne, %158, %c0_i32_46 : i32
    scf.if %159 {
      %c0_47 = arith.constant 0 : index
      %c0_48 = arith.constant 0 : index
      %160 = vector.load %arg1[%c0_47, %c0_48] : memref<2x1xi32, #tpu.memory_space<vmem>>, vector<2x1xi32>
      %161 = tpu.iota {dimensions = array<i32: 0>} : vector<2x1xi32>
      %c8_i32_49 = arith.constant 8 : i32
      %162 = vector.broadcast %c8_i32_49 : i32 to vector<2x1xi32>
      %163 = arith.muli %161, %162 : vector<2x1xi32>
      %164 = arith.addi %160, %163 : vector<2x1xi32>
      %165 = tpu.iota {dimensions = array<i32: 1>} : vector<2x16xi32>
      %166 = vector.broadcast %164 : vector<2x1xi32> to vector<2x16xi32>
      %167 = arith.cmpi eq, %165, %166 : vector<2x16xi32>
      %168 = arith.extui %167 : vector<2x16xi1> to vector<2x16xi32>
      %169 = arith.sitofp %168 : vector<2x16xi32> to vector<2x16xf32>
      %cst_50 = arith.constant dense<0.000000e+00> : vector<2x32xf32>
      %170 = tpu.matmul %169, %155, %cst_50 {dimension_numbers = #tpu.dot_dimension_numbers<[1], [0], [0], [1], [0, 0, 1, 1], [], []>} : vector<2x16xf32>, vector<16x32xf32>, vector<2x32xf32> -> vector<2x32xf32>
      %171 = vector.extract_strided_slice %5 {offsets = [6, 0], sizes = [1, 32], strides = [1, 1]} : vector<8x32xf32> to vector<1x32xf32>
      %172 = vector.extract_strided_slice %5 {offsets = [7, 0], sizes = [1, 32], strides = [1, 1]} : vector<8x32xf32> to vector<1x32xf32>
      %cst_51 = arith.constant dense<0.000000e+00> : vector<2xf32>
      %173 = vector.multi_reduction <add>, %170, %cst_51 [1] : vector<2x32xf32> to vector<2xf32>
      %174 = vector.shape_cast %173 : vector<2xf32> to vector<2x1xf32>
      %cst_52 = arith.constant 3.200000e+01 : f32
      %175 = vector.broadcast %cst_52 : f32 to vector<2x1xf32>
      %176 = arith.divf %174, %175 : vector<2x1xf32>
      %177 = vector.broadcast %176 : vector<2x1xf32> to vector<2x32xf32>
      %178 = arith.subf %170, %177 : vector<2x32xf32>
      %179 = arith.mulf %178, %178 : vector<2x32xf32>
      %cst_53 = arith.constant dense<0.000000e+00> : vector<2xf32>
      %180 = vector.multi_reduction <add>, %179, %cst_53 [1] : vector<2x32xf32> to vector<2xf32>
      %181 = vector.shape_cast %180 : vector<2xf32> to vector<2x1xf32>
      %cst_54 = arith.constant 3.200000e+01 : f32
      %182 = vector.broadcast %cst_54 : f32 to vector<2x1xf32>
      %183 = arith.divf %181, %182 : vector<2x1xf32>
      %184 = vector.broadcast %176 : vector<2x1xf32> to vector<2x32xf32>
      %185 = arith.subf %170, %184 : vector<2x32xf32>
      %cst_55 = arith.constant 9.99999974E-6 : f32
      %186 = vector.broadcast %cst_55 : f32 to vector<2x1xf32>
      %187 = arith.addf %183, %186 : vector<2x1xf32>
      %188 = math.rsqrt %187 : vector<2x1xf32>
      %189 = vector.broadcast %188 : vector<2x1xf32> to vector<2x32xf32>
      %190 = arith.mulf %185, %189 : vector<2x32xf32>
      %191 = vector.broadcast %171 : vector<1x32xf32> to vector<2x32xf32>
      %192 = arith.mulf %190, %191 : vector<2x32xf32>
      %193 = vector.broadcast %172 : vector<1x32xf32> to vector<2x32xf32>
      %194 = arith.addf %192, %193 : vector<2x32xf32>
      %c0_56 = arith.constant 0 : index
      %c0_57 = arith.constant 0 : index
      %195 = vector.load %arg11[%c0_56, %c0_57] : memref<32x16xf32, #tpu.memory_space<vmem>>, vector<32x16xf32>
      %cst_58 = arith.constant dense<0.000000e+00> : vector<2x16xf32>
      %196 = tpu.matmul %194, %195, %cst_58 {dimension_numbers = #tpu.dot_dimension_numbers<[1], [0], [0], [1], [0, 0, 1, 1], [], []>} : vector<2x32xf32>, vector<32x16xf32>, vector<2x16xf32> -> vector<2x16xf32>
      %c0_59 = arith.constant 0 : index
      %c0_60 = arith.constant 0 : index
      %197 = vector.load %arg12[%c0_59, %c0_60] : memref<2x16xf32, #tpu.memory_space<vmem>>, vector<2x16xf32>
      tpu.vector_store %arg12[%c0_59, %c0_60], %196 {strides = array<i32>} : memref<2x16xf32, #tpu.memory_space<vmem>>, vector<2x16xf32>,
    } else {
    }
    return
  }
  func.func @transform_0(%arg0: i32) -> (i32, i32) {
    %c0_i32 = arith.constant 0 : i32
    %c0_i32_0 = arith.constant 0 : i32
    %c0_i32_1 = arith.constant 0 : i32
    return %c0_i32, %c0_i32_0 : i32, i32
  }
  func.func @transform_1(%arg0: i32) -> (i32, i32) {
    %c0_i32 = arith.constant 0 : i32
    %c0_i32_0 = arith.constant 0 : i32
    %c0_i32_1 = arith.constant 0 : i32
    return %c0_i32, %c0_i32_0 : i32, i32
  }
  func.func @transform_2(%arg0: i32) -> (i32, i32) {
    %c0_i32 = arith.constant 0 : i32
    %c0_i32_0 = arith.constant 0 : i32
    %c0_i32_1 = arith.constant 0 : i32
    return %c0_i32, %c0_i32_0 : i32, i32
  }
  func.func @transform_3(%arg0: i32) -> (i32, i32, i32) {
    %c0_i32 = arith.constant 0 : i32
    %c0_i32_0 = arith.constant 0 : i32
    %c0_i32_1 = arith.constant 0 : i32
    return %arg0, %c0_i32, %c0_i32_0 : i32, i32, i32
  }
  func.func @transform_4(%arg0: i32) -> (i32, i32, i32) {
    %c0_i32 = arith.constant 0 : i32
    %c0_i32_0 = arith.constant 0 : i32
    %c0_i32_1 = arith.constant 0 : i32
    return %arg0, %c0_i32, %c0_i32_0 : i32, i32, i32
  }
  func.func @transform_5(%arg0: i32) -> (i32, i32, i32) {
    %c0_i32 = arith.constant 0 : i32
    %c0_i32_0 = arith.constant 0 : i32
    %c0_i32_1 = arith.constant 0 : i32
    return %arg0, %c0_i32, %c0_i32_0 : i32, i32, i32
  }
  func.func @transform_6(%arg0: i32) -> (i32, i32, i32) {
    %c0_i32 = arith.constant 0 : i32
    %c0_i32_0 = arith.constant 0 : i32
    %c0_i32_1 = arith.constant 0 : i32
    return %arg0, %c0_i32, %c0_i32_0 : i32, i32, i32
  }
  func.func @transform_7(%arg0: i32) -> (i32, i32, i32) {
    %c0_i32 = arith.constant 0 : i32
    %c0_i32_0 = arith.constant 0 : i32
    %c0_i32_1 = arith.constant 0 : i32
    return %arg0, %c0_i32, %c0_i32_0 : i32, i32, i32
  }
  func.func @transform_8(%arg0: i32) -> (i32, i32, i32) {
    %c0_i32 = arith.constant 0 : i32
    %c0_i32_0 = arith.constant 0 : i32
    %c0_i32_1 = arith.constant 0 : i32
    return %arg0, %c0_i32, %c0_i32_0 : i32, i32, i32
  }
  func.func @transform_9(%arg0: i32) -> (i32, i32, i32) {
    %c0_i32 = arith.constant 0 : i32
    %c0_i32_0 = arith.constant 0 : i32
    %c0_i32_1 = arith.constant 0 : i32
    return %arg0, %c0_i32, %c0_i32_0 : i32, i32, i32
  }
  func.func @transform_10(%arg0: i32) -> (i32, i32) {
    %c0_i32 = arith.constant 0 : i32
    %c0_i32_0 = arith.constant 0 : i32
    %c0_i32_1 = arith.constant 0 : i32
    return %c0_i32, %c0_i32_0 : i32, i32
  }
  func.func @transform_11(%arg0: i32) -> (i32, i32) {
    %c0_i32 = arith.constant 0 : i32
    %c0_i32_0 = arith.constant 0 : i32
    %c0_i32_1 = arith.constant 0 : i32
    return %c0_i32, %c0_i32_0 : i32, i32
  }
}

</mosaic_0001>

<bundles_post_ra>
// kernel: tpu_custom_call.1
= control target key start
LH: loop header
LB: loop body
LE: loop exit
PB: predicated region body
PF: predicated region fallthrough
CT: control target
= control target key end

     0   :  { %s3036_s0 = inlined_call_operand.vmem [shape: s32[2,1], index: 0, kind: input, shape index: {}]   ;;  %s3037_s1 = inlined_call_operand.vmem [shape: f32[16,32], index: 1, kind: input, shape index: {}]   ;;  %s3038_s2 = inlined_call_operand.vmem [shape: f32[16,32], index: 2, kind: input, shape index: {}]   ;;  %s3039_s3 = inlined_call_operand.vmem [shape: f32[2,32,96], index: 3, kind: input, shape index: {}]   ;;  %s3040_s4 = inlined_call_operand.vmem [shape: f32[2,1,96], index: 4, kind: input, shape index: {}]   ;;  %s3041_s5 = inlined_call_operand.vmem [shape: f32[2,32,32], index: 5, kind: input, shape index: {}]   ;;  %s3042_s6 = inlined_call_operand.vmem [shape: f32[2,32,128], index: 6, kind: input, shape index: {}]   ;;  %s3043_s7 = inlined_call_operand.vmem [shape: f32[2,1,128], index: 7, kind: input, shape index: {}]   ;;  %s3044_s8 = inlined_call_operand.vmem [shape: f32[2,128,32], index: 8, kind: input, shape index: {}]   ;;  %s3045_s9 = inlined_call_operand.vmem [shape: f32[2,8,32], index: 9, kind: input, shape index: {}]   ;;  %s3046_s10 = inlined_call_operand.vmem [shape: f32[32,16], index: 10, kind: input, shape index: {}]   ;;  %s3047_s11 = inlined_call_operand.hbm [shape: f32[2,16], index: 11, kind: output, shape index: {}]  }
   0x1   :  { %3048 = sst [smem:[#allocation6_spill]] %s3039_s3 }
   0x2   :  { %16 = vsyncpa [#allocation4], 0  ;;  %s2725_s17 = smov 0  }
   0x3 LB: > { %s2731_s18 = sadd.s32 4294967295, %s2649_s17   ;;  %p2114_p0 = scmp.ge.s32.totalorder %s2649_s17, 1  ;;  %s2649_s17 = sphi %s2725_s17, %s22_s17  }
   0x4   : > { %p388_p1 = scmp.lt.s32.totalorder %s2649_s17, 3 }
   0x6   : > { %p389_p2 = pnand %p2114_p0, %p388_p1 }
   0x7   : > { %p448_p3 = scmp.lt.s32.totalorder (!%p389_p2), %s2731_s18, 1  ;;  %s3049_s3 = sld [smem:[#allocation6_spill]] (!%p389_p2) }
   0x8   : > { %392 = sbr.rel (%p389_p2) target bundleno = 3578 (0xdfa), region = 64  ;;  %p2124_p4 = scmp.ne.s32.totalorder (!%p389_p2), %s2731_s18, 0 }
   0xf   : > { %s2737_s19 = scalar_select %p448_p3, %s2731_s18, 1 }
  0x10   : > { %481 = sbr.rel (%p2124_p4) target bundleno = 23 (0x17), region = 68  ;;  %v482_v0 = vld [vmem:[%s3037_s1] sm:$0xff] (!%p2124_p4)  ;;  %vm488_vm0 = vcmask (!%p2124_p4), 261120   ;;  %v483_v2 = vld [vmem:[%s3037_s1 + $0x8] sm:$0xff] (!%p2124_p4) }
  0x11   : > { %s2167_s20 = sshll.u32 %s2737_s19, 5  ;;  %s468_s16 = scalar_lea.vmem %s3043_s7, %s2737_s19  ;;  %v484_v1 = vld [vmem:[%s3038_s2] sm:$0xff] (!%p2124_p4)  ;;  %v485_v4 = vld [vmem:[%s3038_s2 + $0x8] sm:$0xff] (!%p2124_p4) }
  0x12   : > { %s2747_s26 = scalar_lea.vmem %s3049_s3, %s2167_s20  ;;  %s2752_s29 = scalar_lea.vmem %s3041_s5, %s2167_s20  ;;  %v486_v3 = vadd.f32 (!%p2124_p4), %v484_v1, %v482_v0  ;;  %v487_v5 = vadd.f32 (!%p2124_p4), %v485_v4, %v483_v2 }
  0x13   : > { %s2757_s13 = scalar_lea.vmem %s3042_s6, %s2167_s20  ;;  %s2170_s21 = sshll.u32 %s2737_s19, 7 }
  0x14   : > { %s2123_s22 = sshll.u32 %s2737_s19, 3  ;;  %s2768_s25 = scalar_lea.vmem %s3044_s8, %s2170_s21  ;;  %489 = vst.msk [vmem:[#allocation2] sm:$0xff] (!%p2124_p4), %vm488_vm0, %v486_v3  ;;  %490 = vst.msk [vmem:[#allocation2 + $0x8] sm:$0xff] (!%p2124_p4), %vm488_vm0, %v487_v5 }
  0x15   : > { %s2773_s28 = scalar_lea.vmem %s3045_s9, %s2123_s22 }
  0x17 PF: > { %vm507_vm1 = vcmask 261120   ;;  %v547_v20 = vld [vmem:[%s2747_s26] sm:$0xff]  ;;  %v548_v21 = vld [vmem:[%s2747_s26 + $0x8] sm:$0xff]  ;;  %v549_v22 = vld [vmem:[%s2747_s26 + $0x10] sm:$0xff]  ;;  %v494_v28 = vlaneseq  ;;  %s3050_s24 = scalar_lea.vmem %s3040_s4, %s2737_s19  ;;  %vm657_vm2 = vcmask 64512   ;;  %s2651_s27 = smov 120  }
  0x18   : > { %v2389_v23 = vpack.c.bf16 %v548_v21, %v547_v20  ;;  %v550_v24 = vld [vmem:[%s2747_s26 + $0x18] sm:$0xff]  ;;  %v2809_v35 = vld [vmem:[%s2773_s28] sm:$0xff]  ;;  %s2652_s28 = smov 112   ;;  %s2653_s20 = smov 104   ;;  %vm2834_vm3 = vmpackc.low %vm657_vm2, %vm657_vm2  ;;  %vm1002_vm8 = vcmask 130048   ;;  %vm1467_vm9 = vcmask 195584  }
  0x19   : > { %v2393_v25 = vpack.c.bf16 %v550_v24, %v549_v22  ;;  %v2805_v32 = vshrl.u32 %v494_v28, 7  ;;  %v2125_v47 = vld [vmem:[%s3050_s24] ss:$0 sm:$0xff]  ;;  %s2654_s30 = smov 96   ;;  %s2656_s12 = smov 64  }
  0x1a   : > { %2390 = vmatprep.subr.bf16.mxu1 %v2389_v23  ;;  %s2657_s14 = smov 8   ;;  %s2658_s23 = smov 16  }
  0x1b   : > { %v2788_v6 = vld [vmem:[#allocation2] sm:$0xff]  ;;  %v2790_v7 = vld [vmem:[#allocation2 + $0x8] sm:$0xff]  ;;  %2392 = vmatpush3.bf16.msra.mxu1 %v2389_v23  ;;  %v537_v34 = vsub.s32 0, %v2805_v32  ;;  %v543_v36 = vsub.s32 1, %v2805_v32  ;;  %s2659_s15 = smov 24   ;;  %p2159_p5 = scmp.ne.s32.totalorder %s2731_s18, 1 }
  0x1c   : > { %v508_v8 = vsel %vm507_vm1, %v2788_v6, 0.0  ;;  %v511_v9 = vsel %vm507_vm1, %v2790_v7, 0.0  ;;  %2394 = vmatprep.subr.bf16.mxu1 %v2393_v25  ;;  %vm2662_vm10 = vmmov (!%p2159_p5), 0   ;;  %vm1896_vm12 = vcmask (!%p2159_p5), 254976  }
  0x1d   : > { %509 = vadd.xlane.f32.xlu0 %v508_v8  ;;  %v538_v37 = vrot.slane %v2809_v35, %v537_v34  ;;  %v544_v40 = vrot.slane %v2809_v35, %v543_v36  ;;  %vm1997_vm13 = vcmask (!%p2159_p5), 123904  }
  0x1f   : > { %2396 = vmatpush3.bf16.msra.mxu1 %v2393_v25 }
  0x21   : > { %512 = vadd.xlane.f32.xlu0 %v511_v9 }
  0xaa   : > { %v510_v10 = vpop.xlane.xlu0 %509 }
  0xab   : > { %v515_v11 = vmul.f32 0.03125, %v510_v10 }
  0xad   : > { %v517_v12 = vsub.f32 %v2788_v6, %v515_v11 }
  0xae   : > { %v513_v13 = vpop.xlane.xlu0 %512 }
  0xaf   : > { %v516_v14 = vmul.f32 0.03125, %v513_v13  ;;  %v519_v15 = vmul.f32 %v517_v12, %v517_v12 }
  0xb1   : > { %v518_v16 = vsub.f32 %v2790_v7, %v516_v14  ;;  %v521_v17 = vsel %vm507_vm1, %v519_v15, 0.0 }
  0xb2   : > { %522 = vadd.xlane.f32.xlu1 %v521_v17  ;;  %v496_v17 = vadd.s32 8, %v2805_v32 }
  0xb3   : > { %v520_v18 = vmul.f32 %v518_v16, %v518_v16 }
  0xb5   : > { %v524_v19 = vsel %vm507_vm1, %v520_v18, 0.0  ;;  %v2865_v18 = vand.u32 127, %v494_v28 }
  0xb6   : > { %525 = vadd.xlane.f32.xlu1 %v524_v19  ;;  %v2655_v19 = vmov 0.0  }
  0xb7   : > { %vm500_vm4 = vcmp.gt.s32.totalorder %v2865_v18, %v496_v17  ;;  %vm502_vm5 = vcmp.lt.s32.totalorder %v2865_v18, 8  ;;  %vm499_vm7 = vcmp.gt.s32.totalorder %v2865_v18, %v2805_v32 }
  0xb8   : > { %vm504_vm6 = vmor %vm500_vm4, %vm502_vm5  ;;  %v505_v21 = vsel %vm499_vm7, -1e+09, %v2655_v19 }
  0xb9   : > { %v506_v20 = vsel %vm504_vm6, -1e+09, %v2655_v19 }
 0x13f   : > { %v523_v26 = vpop.xlane.xlu1 %522 }
 0x140   : > { %v527_v27 = vmul.f32 0.03125, %v523_v26 }
 0x142   : > { %v529_v29 = vadd.f32 1e-05, %v527_v27 }
 0x143   : > { %v526_v30 = vpop.xlane.xlu1 %525 }
 0x144   : > { %2562 = vrsqrt.f32 %v529_v29  ;;  %v528_v31 = vmul.f32 0.03125, %v526_v30 }
 0x146   : > { %v530_v33 = vadd.f32 1e-05, %v528_v31 }
 0x148   : > { %2564 = vrsqrt.f32 %v530_v33 }
 0x14e   : > { %v2563_v38 = vpop.eup %2562 }
 0x14f   : > { %v533_v39 = vmul.f32 %v2563_v38, %v517_v12 }
 0x151   : > { %v539_v41 = vmul.f32 %v538_v37, %v533_v39 }
 0x152   : > { %v2565_v42 = vpop.eup %2564 }
 0x153   : > { %v534_v43 = vmul.f32 %v2565_v42, %v518_v16  ;;  %v545_v44 = vadd.f32 %v544_v40, %v539_v41 }
 0x155   : > { %v540_v45 = vmul.f32 %v538_v37, %v534_v43  ;;  %2255 = vmatprep.mubr.msk.f32.mxu1 %vm507_vm1, %v545_v44 }
 0x157   : > { %v546_v46 = vadd.f32 %v544_v40, %v540_v45 }
 0x159   : > { %2256 = vmatmul.mubr.msk.f32.vlgmr.msra.gmra.mrb[0].mxu1 %vm507_vm1, %v546_v46 }
 0x22c   : > { %v2257_v48 = vpop.f32.mrb[0].mxu1 }
 0x22d   : > { %v636_v49 = vadd.f32 %v2257_v48, %v2125_v47  ;;  %v630_v50 = vpop.f32.mrb[1].mxu1 }
 0x22e   : > { %v631_v51 = vadd.f32 %v2125_v47, %v630_v50 }
 0x22f   : > { %643 = vrot.lane.b32.xlu1 %v636_v49, %s2651_s27 }
 0x230   : > { %641 = vrot.lane.b32.xlu0 %v631_v51, %s2651_s27  ;;  %2262 = vmatprep.mubr.msk.f32.mxu1 %vm657_vm2, %v631_v51  ;;  %v2822_v52 = vpack.i.bf16 %v636_v49, %v631_v51 }
 0x233   : > { %647 = vrot.lane.b32.xlu1 %v636_v49, %s2652_s28 }
 0x234   : > { %649 = vrot.lane.b32.xlu0 %v631_v51, %s2653_s20 }
 0x237   : > { %645 = vrot.lane.b32.xlu1 %v631_v51, %s2652_s28 }
 0x238   : > { %2523 = vrot.lane.b32.xlu0 %v2822_v52, %s2654_s30 }
 0x23b   : > { %651 = vrot.lane.b32.xlu1 %v636_v49, %s2653_s20 }
 0x2a1   : > { %v644_v53 = vpop.permute.xlu1 %643 }
 0x2a2   : > { %v642_v54 = vpop.permute.xlu0 %641 }
 0x2a3   : > { %v2825_v55 = vpack.i.bf16 %v644_v53, %v642_v54 }
 0x2a5   : > { %v648_v56 = vpop.permute.xlu1 %647  ;;  %2528 = vrot.lane.b32.xlu1 %v2825_v55, %s2654_s30 }
 0x2a6   : > { %v650_v57 = vpop.permute.xlu0 %649 }
 0x2a7   : > { %2283 = vmatprep.mubr.msk.f32.mxu0 %vm657_vm2, %v650_v57 }
 0x2a9   : > { %v646_v58 = vpop.permute.xlu1 %645 }
 0x2aa   : > { %v2829_v59 = vpack.i.bf16 %v648_v56, %v646_v58  ;;  %v2524_v60 = vpop.permute.xlu0 %2523 }
 0x2ab   : > { %v2526_v61 = vunpack.i.h.bf16 %v2524_v60  ;;  %v2525_v62 = vunpack.i.l.bf16 %v2524_v60 }
 0x2ac   : > { %2533 = vrot.lane.b32.xlu0 %v2829_v59, %s2654_s30 }
 0x2ad   : > { %v2397_v0 = vpack.c.bf16 %v2526_v61, %v2525_v62  ;;  %v652_v1 = vpop.permute.xlu1 %651 }
 0x2ae   : > { %v2838_v2 = vpack.i.bf16 %v652_v1, %v650_v57 }
 0x2af   : > { %2399 = vmatprep.subr.msk.bf16.mxu1 %vm2834_vm3, %v2397_v0 }
 0x2b0   : > { %2538 = vrot.lane.b32.xlu1 %v2838_v2, %s2654_s30  ;;  %2402 = vmatpush3.bf16.xpose.msk.msra.mxu1 %vm2834_vm3, %v2397_v0 }
 0x2b7   : > { %2263 = vmatmul.mubr.msk.f32.vlgmr.msra.gmra.mrb[2].mxu1 %vm657_vm2, %v636_v49 }
 0x2b8   : > { %2269 = vmatprep.mubr.msk.f32.mxu1 %vm657_vm2, %v642_v54 }
 0x317   : > { %v2529_v3 = vpop.permute.xlu1 %2528 }
 0x318   : > { %v2531_v4 = vunpack.i.h.bf16 %v2529_v3  ;;  %v2530_v5 = vunpack.i.l.bf16 %v2529_v3 }
 0x31a   : > { %v2403_v8 = vpack.c.bf16 %v2531_v4, %v2530_v5 }
 0x31c   : > { %2405 = vmatprep.subr.msk.bf16.mxu1 %vm2834_vm3, %v2403_v8 }
 0x31d   : > { %2408 = vmatpush3.bf16.xpose.msk.msra.mxu1 %vm2834_vm3, %v2403_v8 }
 0x31e   : > { %v2534_v9 = vpop.permute.xlu0 %2533 }
 0x31f   : > { %v2536_v10 = vunpack.i.h.bf16 %v2534_v9  ;;  %v2535_v11 = vunpack.i.l.bf16 %v2534_v9 }
 0x321   : > { %v2409_v12 = vpack.c.bf16 %v2536_v10, %v2535_v11 }
 0x322   : > { %v2539_v13 = vpop.permute.xlu1 %2538 }
 0x323   : > { %v2541_v14 = vunpack.i.h.bf16 %v2539_v13  ;;  %v2540_v15 = vunpack.i.l.bf16 %v2539_v13  ;;  %2411 = vmatprep.subr.msk.bf16.mxu1 %vm2834_vm3, %v2409_v12 }
 0x324   : > { %2270 = vmatmul.mubr.msk.f32.vlgmr.msra.gmra.mrb[4].mxu1 %vm657_vm2, %v644_v53 }
 0x325   : > { %2414 = vmatpush3.bf16.xpose.msk.msra.mxu1 %vm2834_vm3, %v2409_v12  ;;  %2276 = vmatprep.mubr.msk.f32.mxu1 %vm657_vm2, %v646_v58  ;;  %v2415_v16 = vpack.c.bf16 %v2541_v14, %v2540_v15 }
 0x327   : > { %2417 = vmatprep.subr.msk.bf16.mxu0 %vm2834_vm3, %v2415_v16 }
 0x328   : > { %2420 = vmatpush3.bf16.xpose.msk.msra.mxu0 %vm2834_vm3, %v2415_v16 }
 0x32c   : > { %2277 = vmatmul.mubr.msk.f32.vlgmr.msra.gmra.mrb[6].mxu1 %vm657_vm2, %v648_v56 }
 0x32f   : > { %2284 = vmatmul.mubr.msk.f32.vlgmr.msra.gmra.mrb[0].mxu0 %vm657_vm2, %v652_v1 }
 0x38a   : > { %v2264_v22 = vpop.f32.mrb[2].mxu1 }
 0x38b   : > { %v738_v23 = vadd.f32 %v2264_v22, %v506_v20  ;;  %v732_v24 = vpop.f32.mrb[3].mxu1 }
 0x38c   : > { %v733_v25 = vadd.f32 %v732_v24, %v505_v21 }
 0x38d   : > { %v1006_v26 = vsel %vm1002_vm8, %v738_v23, -inf }
 0x38e   : > { %1007 = vmax.xlane.f32.xlu1 %v1006_v26  ;;  %v1003_v27 = vsel %vm1002_vm8, %v733_v25, -inf }
 0x38f   : > { %1004 = vmax.xlane.f32.xlu0 %v1003_v27 }
 0x3f7   : > { %v2271_v28 = vpop.f32.mrb[4].mxu1 }
 0x3f8   : > { %v825_v29 = vadd.f32 %v2271_v28, %v506_v20  ;;  %v819_v30 = vpop.f32.mrb[5].mxu1 }
 0x3f9   : > { %v820_v31 = vadd.f32 %v819_v30, %v505_v21 }
 0x3fa   : > { %v1012_v33 = vsel %vm1002_vm8, %v825_v29, -inf }
 0x3fb   : > { %1013 = vmax.xlane.f32.xlu0 %v1012_v33  ;;  %v1009_v34 = vsel %vm1002_vm8, %v820_v31, -inf }
 0x3ff   : > { %v2278_v36 = vpop.f32.mrb[6].mxu1  ;;  %1010 = vmax.xlane.f32.xlu0 %v1009_v34 }
 0x400   : > { %v912_v37 = vadd.f32 %v2278_v36, %v506_v20  ;;  %v906_v38 = vpop.f32.mrb[7].mxu1 }
 0x401   : > { %v907_v39 = vadd.f32 %v906_v38, %v505_v21 }
 0x402   : > { %v2285_v40 = vpop.f32.mrb[0].mxu0  ;;  %v1018_v41 = vsel %vm1002_vm8, %v912_v37, -inf }
 0x403   : > { %v999_v42 = vadd.f32 %v2285_v40, %v506_v20  ;;  %v993_v43 = vpop.f32.mrb[1].mxu0  ;;  %1019 = vmax.xlane.f32.xlu1 %v1018_v41  ;;  %v1015_v44 = vsel %vm1002_vm8, %v907_v39, -inf }
 0x404   : > { %v994_v45 = vadd.f32 %v993_v43, %v505_v21  ;;  %1016 = vmax.xlane.f32.xlu0 %v1015_v44 }
 0x405   : > { %v1024_v46 = vsel %vm1002_vm8, %v999_v42, -inf }
 0x406   : > { %v1021_v47 = vsel %vm1002_vm8, %v994_v45, -inf }
 0x407   : > { %1025 = vmax.xlane.f32.xlu1 %v1024_v46 }
 0x408   : > { %1022 = vmax.xlane.f32.xlu0 %v1021_v47 }
 0x41b   : > { %v1008_v48 = vpop.xlane.xlu1 %1007 }
 0x41c   : > { %v1028_v49 = vsub.f32 %v738_v23, %v1008_v48  ;;  %v1005_v50 = vpop.xlane.xlu0 %1004 }
 0x41d   : > { %v1027_v51 = vsub.f32 %v733_v25, %v1005_v50 }
 0x41e   : > { %v1037_v53 = vmul.f32 1.442695, %v1028_v49 }
 0x41f   : > { %v1035_v54 = vmul.f32 1.442695, %v1027_v51 }
 0x420   : > { %2566 = vpow2.f32 %v1037_v53 }
 0x421   : > { %2568 = vpow2.f32 %v1035_v54 }
 0x42a   : > { %v2879_v56 = vpop.eup %2566 }
 0x42b   : > { %v2569_v57 = vpop.eup %2568  ;;  %v1054_v58 = vsel %vm1002_vm8, %v2879_v56, 0.0 }
 0x42c   : > { %1055 = vadd.xlane.f32.xlu1 %v1054_v58  ;;  %v1051_v60 = vsel %vm1002_vm8, %v2569_v57, 0.0 }
 0x42d   : > { %1052 = vadd.xlane.f32.xlu0 %v1051_v60 }
 0x488   : > { %v1014_v61 = vpop.xlane.xlu0 %1013 }
 0x489   : > { %v1030_v62 = vsub.f32 %v825_v29, %v1014_v61 }
 0x48b   : > { %v1041_v63 = vmul.f32 1.442695, %v1030_v62 }
 0x48c   : > { %v1011_v0 = vpop.xlane.xlu0 %1010 }
 0x48d   : > { %2570 = vpow2.f32 %v1041_v63  ;;  %v1029_v1 = vsub.f32 %v820_v31, %v1011_v0 }
 0x48f   : > { %v1039_v3 = vmul.f32 1.442695, %v1029_v1 }
 0x490   : > { %v1020_v4 = vpop.xlane.xlu1 %1019 }
 0x491   : > { %2572 = vpow2.f32 %v1039_v3  ;;  %v1017_v5 = vpop.xlane.xlu0 %1016  ;;  %v1032_v8 = vsub.f32 %v912_v37, %v1020_v4 }
 0x492   : > { %v1031_v9 = vsub.f32 %v907_v39, %v1017_v5 }
 0x493   : > { %v1045_v15 = vmul.f32 1.442695, %v1032_v8 }
 0x494   : > { %v1026_v10 = vpop.xlane.xlu1 %1025  ;;  %v1043_v17 = vmul.f32 1.442695, %v1031_v9 }
 0x495   : > { %v1034_v11 = vsub.f32 %v999_v42, %v1026_v10  ;;  %v1023_v12 = vpop.xlane.xlu0 %1022 }
 0x496   : > { %v1033_v13 = vsub.f32 %v994_v45, %v1023_v12  ;;  %v1471_v12 = vld [vmem:[%s2752_s29 + $0x8] sm:$0xff] }
 0x497   : > { %v2884_v14 = vpop.eup %2570  ;;  %v1049_v16 = vmul.f32 1.442695, %v1034_v11  ;;  %v1470_v11 = vld [vmem:[%s2752_s29] sm:$0xff] }
 0x498   : > { %v1047_v19 = vmul.f32 1.442695, %v1033_v13  ;;  %v1060_v20 = vsel %vm1002_vm8, %v2884_v14, 0.0  ;;  %v2437_v13 = vpack.c.bf16 %v1471_v12, %v1470_v11 }
 0x499   : > { %2574 = vpow2.f32 %v1049_v16  ;;  %1061 = vadd.xlane.f32.xlu1 %v1060_v20 }
 0x49a   : > { %2576 = vpow2.f32 %v1047_v19 }
 0x49b   : > { %v2888_v21 = vpop.eup %2572  ;;  %2578 = vpow2.f32 %v1045_v15  ;;  %v1473_v15 = vld [vmem:[%s2752_s29 + $0x18] sm:$0xff] }
 0x49c   : > { %2580 = vpow2.f32 %v1043_v17  ;;  %v1057_v22 = vsel %vm1002_vm8, %v2888_v21, 0.0 }
 0x49d   : > { %1058 = vadd.xlane.f32.xlu0 %v1057_v22 }
 0x4a3   : > { %v2892_v23 = vpop.eup %2574 }
 0x4a4   : > { %v2894_v24 = vpop.eup %2576  ;;  %v1072_v25 = vsel %vm1002_vm8, %v2892_v23, 0.0 }
 0x4a5   : > { %v2898_v26 = vpop.eup %2578  ;;  %1073 = vadd.xlane.f32.xlu1 %v1072_v25  ;;  %v1069_v27 = vsel %vm1002_vm8, %v2894_v24, 0.0 }
 0x4a6   : > { %v2581_v28 = vpop.eup %2580  ;;  %1070 = vadd.xlane.f32.xlu0 %v1069_v27  ;;  %v1066_v29 = vsel %vm1002_vm8, %v2898_v26, 0.0 }
 0x4a7   : > { %v1063_v30 = vsel %vm1002_vm8, %v2581_v28, 0.0 }
 0x4a9   : > { %1067 = vadd.xlane.f32.xlu1 %v1066_v29 }
 0x4aa   : > { %1064 = vadd.xlane.f32.xlu0 %v1063_v30 }
 0x4b9   : > { %v1056_v36 = vpop.xlane.xlu1 %1055 }
 0x4ba   : > { %2548 = vrot.lane.b32.xlu1 %v2825_v55, %s2656_s12  ;;  %v1053_v31 = vpop.xlane.xlu0 %1052 }
 0x4bb   : > { %2582 = vrcp.f32 %v1053_v31 }
 0x4bc   : > { %2584 = vrcp.f32 %v1056_v36 }
 0x4be   : > { %2553 = vrot.lane.b32.xlu1 %v2829_v59, %s2656_s12 }
 0x4c0   : > { %2543 = vrot.lane.b32.xlu0 %v2822_v52, %s2656_s12 }
 0x4c2   : > { %2558 = vrot.lane.b32.xlu1 %v2838_v2, %s2656_s12 }
 0x4c5   : > { %v2583_v33 = vpop.eup %2582 }
 0x4c6   : > { %v1083_v34 = vmul.f32 %v2583_v33, %v2569_v57  ;;  %v2585_v47 = vpop.eup %2584 }
 0x4c7   : > { %v1084_v58 = vmul.f32 %v2585_v47, %v2879_v56 }
 0x4c8   : > { %2290 = vmatprep.mubr.msk.f32.mxu1 %vm1002_vm8, %v1083_v34 }
 0x526   : > { %v1062_v37 = vpop.xlane.xlu1 %1061 }
 0x52a   : > { %v1059_v38 = vpop.xlane.xlu0 %1058 }
 0x52b   : > { %2586 = vrcp.f32 %v1059_v38 }
 0x532   : > { %v1074_v39 = vpop.xlane.xlu1 %1073 }
 0x533   : > { %v1071_v40 = vpop.xlane.xlu0 %1070 }
 0x535   : > { %v2587_v50 = vpop.eup %2586 }
 0x536   : > { %v1068_v55 = vpop.xlane.xlu1 %1067  ;;  %v1085_v0 = vmul.f32 %v2587_v50, %v2888_v21 }
 0x537   : > { %2588 = vrcp.f32 %v1068_v55  ;;  %v1065_v41 = vpop.xlane.xlu0 %1064 }
 0x538   : > { %2590 = vrcp.f32 %v1065_v41 }
 0x539   : > { %2592 = vrcp.f32 %v1062_v37 }
 0x53a   : > { %2594 = vrcp.f32 %v1071_v40  ;;  %v2549_v52 = vpop.permute.xlu1 %2548  ;;  %v1559_v40 = vsub.s32 2, %v2805_v32 }
 0x53b   : > { %v2544_v59 = vpop.permute.xlu0 %2543  ;;  %v2551_v2 = vunpack.i.h.bf16 %v2549_v52  ;;  %v2550_v42 = vunpack.i.l.bf16 %v2549_v52  ;;  %2596 = vrcp.f32 %v1074_v39 }
 0x53c   : > { %v2546_v43 = vunpack.i.h.bf16 %v2544_v59  ;;  %v2545_v44 = vunpack.i.l.bf16 %v2544_v59  ;;  %v1560_v55 = vrot.slane %v2809_v35, %v1559_v40 }
 0x53d   : > { %v2425_v51 = vpack.c.bf16 %v2551_v2, %v2550_v42 }
 0x53e   : > { %v2421_v45 = vpack.c.bf16 %v2546_v43, %v2545_v44  ;;  %v2554_v46 = vpop.permute.xlu1 %2553 }
 0x53f   : > { %v2556_v48 = vunpack.i.h.bf16 %v2554_v46  ;;  %v2555_v49 = vunpack.i.l.bf16 %v2554_v46 }
 0x540   : > { %2422 = vmatprep.subr.bf16.mxu1 %v2421_v45 }
 0x541   : > { %v2589_v53 = vpop.eup %2588  ;;  %v2429_v54 = vpack.c.bf16 %v2556_v48, %v2555_v49  ;;  %2424 = vmatpush3.bf16.msra.mxu1 %v2421_v45 }
 0x542   : > { %v2591_v57 = vpop.eup %2590  ;;  %v2559_v60 = vpop.permute.xlu1 %2558  ;;  %2426 = vmatprep.subr.bf16.mxu1 %v2425_v51  ;;  %v1088_v4 = vmul.f32 %v2589_v53, %v2898_v26 }
 0x543   : > { %v2593_v61 = vpop.eup %2592  ;;  %v2561_v62 = vunpack.i.h.bf16 %v2559_v60  ;;  %v2560_v63 = vunpack.i.l.bf16 %v2559_v60  ;;  %2430 = vmatprep.subr.bf16.mxu0 %v2429_v54  ;;  %v1087_v1 = vmul.f32 %v2591_v57, %v2581_v28  ;;  %v1601_v57 = vld [vmem:[%s2757_s13] sm:$0xff] }
 0x544   : > { %v2595_v3 = vpop.eup %2594  ;;  %2291 = vmatmul.mubr.msk.f32.vlgmr.msra.gmra.mrb[8].mxu1 %vm1002_vm8, %v1084_v58  ;;  %2432 = vmatpush3.bf16.msra.mxu0 %v2429_v54  ;;  %v1086_v56 = vmul.f32 %v2593_v61, %v2884_v14  ;;  %v1472_v14 = vld [vmem:[%s2752_s29 + $0x10] sm:$0xff]  ;;  %v1602_v58 = vld [vmem:[%s2757_s13 + $0x8] sm:$0xff] }
 0x545   : > { %v2433_v5 = vpack.c.bf16 %v2561_v62, %v2560_v63  ;;  %2428 = vmatpush3.bf16.msra.mxu1 %v2425_v51  ;;  %2297 = vmatprep.mubr.msk.f32.mxu1 %vm1002_vm8, %v1085_v0  ;;  %v2597_v8 = vpop.eup %2596  ;;  %v1089_v9 = vmul.f32 %v2595_v3, %v2894_v24  ;;  %v2441_v16 = vpack.c.bf16 %v1473_v15, %v1472_v14  ;;  %v1603_v61 = vld [vmem:[%s2757_s13 + $0x10] sm:$0xff]  ;;  %v1604_v62 = vld [vmem:[%s2757_s13 + $0x18] sm:$0xff] }
 0x546   : > { %2304 = vmatprep.mubr.msk.f32.mxu0 %vm1002_vm8, %v1087_v1  ;;  %v1090_v10 = vmul.f32 %v2597_v8, %v2892_v23  ;;  %2438 = vmatprep.subr.bf16.mxu0 %v2437_v13  ;;  %v2445_v60 = vpack.c.bf16 %v1602_v58, %v1601_v57  ;;  %v2449_v63 = vpack.c.bf16 %v1604_v62, %v1603_v61  ;;  %v1591_v8 = vsub.s32 3, %v2805_v32 }
 0x547   : > { %2305 = vmatmul.mubr.msk.f32.vlgmr.msra.gmra.mrb[2].mxu0 %vm1002_vm8, %v1088_v4  ;;  %2434 = vmatprep.subr.bf16.mxu1 %v2433_v5 }
 0x548   : > { %2298 = vmatmul.mubr.msk.f32.vlgmr.msra.gmra.mrb[10].mxu1 %vm1002_vm8, %v1086_v56  ;;  %2440 = vmatpush3.bf16.msra.mxu0 %v2437_v13 }
 0x549   : > { %2436 = vmatpush3.bf16.msra.mxu1 %v2433_v5  ;;  %2311 = vmatprep.mubr.msk.f32.mxu1 %vm1002_vm8, %v1089_v9  ;;  %v1597_v9 = vsub.s32 4, %v2805_v32 }
 0x54a   : > { %2442 = vmatprep.subr.bf16.mxu0 %v2441_v16  ;;  %2446 = vmatprep.subr.bf16.mxu1 %v2445_v60 }
 0x54b   : > { %v1598_v13 = vrot.slane %v2809_v35, %v1597_v9 }
 0x54c   : > { %2312 = vmatmul.mubr.msk.f32.vlgmr.msra.gmra.mrb[12].mxu1 %vm1002_vm8, %v1090_v10  ;;  %2444 = vmatpush3.bf16.msra.mxu0 %v2441_v16  ;;  %v1592_v10 = vrot.slane %v2809_v35, %v1591_v8 }
 0x54d   : > { %2448 = vmatpush3.bf16.msra.mxu1 %v2445_v60 }
 0x54e   : > { %2450 = vmatprep.subr.bf16.mxu1 %v2449_v63 }
 0x551   : > { %2452 = vmatpush3.bf16.msra.mxu1 %v2449_v63 }
 0x617   : > { %v2292_v17 = vpop.f32.mrb[8].mxu1 }
 0x618   : > { %v1169_v19 = vpop.f32.mrb[9].mxu1 }
 0x61a   : > { %v2306_v20 = vpop.f32.mrb[2].mxu0 }
 0x61b   : > { %v2299_v21 = vpop.f32.mrb[10].mxu1  ;;  %v1343_v22 = vpop.f32.mrb[3].mxu0 }
 0x61c   : > { %1443 = vrot.lane.b32.xlu1 %v2299_v21, %s2657_s14  ;;  %v1256_v23 = vpop.f32.mrb[11].mxu1  ;;  %v1709_v21 = vld [vmem:[%s2768_s25] sm:$0xff] }
 0x61d   : > { %1441 = vrot.lane.b32.xlu0 %v1256_v23, %s2657_s14 }
 0x61f   : > { %v2313_v24 = vpop.f32.mrb[12].mxu1 }
 0x620   : > { %1451 = vrot.lane.b32.xlu1 %v2306_v20, %s2658_s23  ;;  %v1430_v25 = vpop.f32.mrb[13].mxu1 }
 0x621   : > { %1449 = vrot.lane.b32.xlu0 %v1343_v22, %s2658_s23  ;;  %v1710_v22 = vld [vmem:[%s2768_s25 + $0x8] sm:$0xff] }
 0x622   : > { %v2453_v23 = vpack.c.bf16 %v1710_v22, %v1709_v21 }
 0x624   : > { %1459 = vrot.lane.b32.xlu1 %v2313_v24, %s2659_s15  ;;  %2454 = vmatprep.subr.bf16.mxu0 %v2453_v23  ;;  %v1711_v24 = vld [vmem:[%s2768_s25 + $0x10] sm:$0xff] }
 0x625   : > { %1457 = vrot.lane.b32.xlu0 %v1430_v25, %s2659_s15  ;;  %v1712_v25 = vld [vmem:[%s2768_s25 + $0x18] sm:$0xff] }
 0x68e   : > { %v1444_v26 = vpop.permute.xlu1 %1443 }
 0x68f   : > { %v1442_v27 = vpop.permute.xlu0 %1441  ;;  %v1464_v33 = vsel %vm657_vm2, %v2292_v17, %v1444_v26  ;;  %v2457_v26 = vpack.c.bf16 %v1712_v25, %v1711_v24 }
 0x690   : > { %v1463_v30 = vsel %vm657_vm2, %v1169_v19, %v1442_v27  ;;  %v1713_v27 = vld [vmem:[%s2768_s25 + $0x20] sm:$0xff] }
 0x692   : > { %v1452_v28 = vpop.permute.xlu1 %1451 }
 0x693   : > { %v1450_v29 = vpop.permute.xlu0 %1449  ;;  %v1466_v37 = vsel %vm1002_vm8, %v1464_v33, %v1452_v28  ;;  %v1714_v28 = vld [vmem:[%s2768_s25 + $0x28] sm:$0xff] }
 0x694   : > { %v1465_v34 = vsel %vm1002_vm8, %v1463_v30, %v1450_v29  ;;  %v2461_v29 = vpack.c.bf16 %v1714_v28, %v1713_v27  ;;  %v1715_v30 = vld [vmem:[%s2768_s25 + $0x30] sm:$0xff] }
 0x695   : > { %v1922_v27 = vld [vmem:[%s3046_s10 + $0x10] sm:$0xff] (!%p2159_p5) }
 0x696   : > { %v1460_v31 = vpop.permute.xlu1 %1459 }
 0x697   : > { %v1458_v36 = vpop.permute.xlu0 %1457  ;;  %v1469_v39 = vsel %vm1467_vm9, %v1466_v37, %v1460_v31  ;;  %v1716_v31 = vld [vmem:[%s2768_s25 + $0x38] sm:$0xff] }
 0x698   : > { %v1468_v38 = vsel %vm1467_vm9, %v1465_v34, %v1458_v36  ;;  %v2465_v33 = vpack.c.bf16 %v1716_v31, %v1715_v30  ;;  %v1717_v34 = vld [vmem:[%s2768_s25 + $0x40] sm:$0xff]  ;;  %v1718_v36 = vld [vmem:[%s2768_s25 + $0x48] sm:$0xff] }
 0x699   : > { %2322 = vmatprep.mubr.msk.f32.mxu0 %vm507_vm1, %v1468_v38  ;;  %v2469_v37 = vpack.c.bf16 %v1718_v36, %v1717_v34  ;;  %v1719_v38 = vld [vmem:[%s2768_s25 + $0x50] sm:$0xff]  ;;  %v1912_v36 = vsub.s32 (!%p2159_p5), 6, %v2805_v32 }
 0x69a   : > { %2323 = vmatmul.mubr.msk.f32.vlgmr.msra.gmra.mrb[4].mxu0 %vm507_vm1, %v1469_v39  ;;  %v1720_v39 = vld [vmem:[%s2768_s25 + $0x58] sm:$0xff] }
 0x69b   : > { %2456 = vmatpush3.bf16.msra.mxu0 %v2453_v23  ;;  %v2473_v40 = vpack.c.bf16 %v1720_v39, %v1719_v38  ;;  %v1913_v38 = vrot.slane (!%p2159_p5), %v2809_v35, %v1912_v36 }
 0x69c   : > { %2458 = vmatprep.subr.bf16.mxu0 %v2457_v26 }
 0x69f   : > { %2460 = vmatpush3.bf16.msra.mxu0 %v2457_v26  ;;  %v1920_v26 = vld [vmem:[%s3046_s10] sm:$0xff] (!%p2159_p5) }
 0x6a0   : > { %2462 = vmatprep.subr.bf16.mxu0 %v2461_v29 }
 0x6a3   : > { %2464 = vmatpush3.bf16.msra.mxu0 %v2461_v29  ;;  %v1923_v29 = vld [vmem:[%s3046_s10 + $0x18] sm:$0xff] (!%p2159_p5) }
 0x6a4   : > { %2466 = vmatprep.subr.bf16.mxu0 %v2465_v33  ;;  %v2492_v30 = vpack.c.bf16 (!%p2159_p5), %v1923_v29, %v1922_v27 }
 0x6a7   : > { %2468 = vmatpush3.bf16.msra.mxu0 %v2465_v33 }
 0x6a8   : > { %2470 = vmatprep.subr.bf16.mxu0 %v2469_v37 }
 0x6ab   : > { %2472 = vmatpush3.bf16.msra.mxu0 %v2469_v37  ;;  %v1917_v37 = vsub.s32 (!%p2159_p5), 7, %v2805_v32 }
 0x6ac   : > { %2474 = vmatprep.subr.bf16.mxu0 %v2473_v40 }
 0x6af   : > { %2476 = vmatpush3.bf16.msra.mxu0 %v2473_v40 }
 0x76d   : > { %v2324_v41 = vpop.f32.mrb[4].mxu0 }
 0x76e   : > { %v1556_v52 = vadd.f32 %v2324_v41, %v2790_v7  ;;  %v1546_v59 = vpop.f32.mrb[5].mxu0  ;;  %v1722_v41 = vld [vmem:[%s2768_s25 + $0x68] sm:$0xff] }
 0x76f   : > { %v1555_v2 = vadd.f32 %v1546_v59, %v2788_v6  ;;  %v1723_v59 = vld [vmem:[%s2768_s25 + $0x70] sm:$0xff] }
 0x770   : > { %v2937_v42 = vadd.f32 %v1560_v55, %v1556_v52 }
 0x771   : > { %v2939_v43 = vadd.f32 %v1560_v55, %v1555_v2  ;;  %v1721_v55 = vld [vmem:[%s2768_s25 + $0x60] sm:$0xff]  ;;  %v1724_v2 = vld [vmem:[%s2768_s25 + $0x78] sm:$0xff] }
 0x772   : > { %v1566_v44 = vsel %vm507_vm1, %v2937_v42, 0.0  ;;  %v2477_v52 = vpack.c.bf16 %v1722_v41, %v1721_v55  ;;  %v1918_v55 = vrot.slane (!%p2159_p5), %v2809_v35, %v1917_v37 }
 0x773   : > { %1567 = vadd.xlane.f32.xlu1 %v1566_v44  ;;  %v1563_v45 = vsel %vm507_vm1, %v2939_v43, 0.0  ;;  %v2481_v44 = vpack.c.bf16 %v1724_v2, %v1723_v59 }
 0x774   : > { %1564 = vadd.xlane.f32.xlu0 %v1563_v45  ;;  %2478 = vmatprep.subr.bf16.mxu0 %v2477_v52  ;;  %v2154_v45 = vld [vmem:[%s468_s16] ss:$0 sm:$0xff] }
 0x775   : > { %2480 = vmatpush3.bf16.msra.mxu0 %v2477_v52 }
 0x776   : > { %2482 = vmatprep.subr.bf16.mxu0 %v2481_v44 }
 0x779   : > { %2484 = vmatpush3.bf16.msra.mxu0 %v2481_v44 }
 0x800   : > { %v1568_v46 = vpop.xlane.xlu1 %1567 }
 0x801   : > { %v1570_v47 = vmul.f32 0.03125, %v1568_v46  ;;  %v1565_v7 = vpop.xlane.xlu0 %1564 }
 0x802   : > { %v1569_v6 = vmul.f32 0.03125, %v1565_v7 }
 0x803   : > { %v1572_v48 = vsub.f32 %v2937_v42, %v1570_v47 }
 0x804   : > { %v1571_v49 = vsub.f32 %v2939_v43, %v1569_v6 }
 0x805   : > { %v1574_v53 = vmul.f32 %v1572_v48, %v1572_v48 }
 0x806   : > { %v1573_v50 = vmul.f32 %v1571_v49, %v1571_v49 }
 0x807   : > { %v1578_v54 = vsel %vm507_vm1, %v1574_v53, 0.0 }
 0x808   : > { %v1575_v51 = vsel %vm507_vm1, %v1573_v50, 0.0 }
 0x809   : > { %1576 = vadd.xlane.f32.xlu0 %v1575_v51 }
 0x80d   : > { %1579 = vadd.xlane.f32.xlu0 %v1578_v54 }
 0x896   : > { %v1577_v0 = vpop.xlane.xlu0 %1576 }
 0x897   : > { %v1581_v1 = vmul.f32 0.03125, %v1577_v0  ;;  %v1804_v0 = vsub.s32 5, %v2805_v32 }
 0x899   : > { %v1583_v3 = vadd.f32 1e-05, %v1581_v1  ;;  %v1805_v1 = vrot.slane %v2809_v35, %v1804_v0 }
 0x89a   : > { %v1580_v4 = vpop.xlane.xlu0 %1579 }
 0x89b   : > { %2598 = vrsqrt.f32 %v1583_v3  ;;  %v1582_v5 = vmul.f32 0.03125, %v1580_v4 }
 0x89d   : > { %v1584_v56 = vadd.f32 1e-05, %v1582_v5 }
 0x89f   : > { %2600 = vrsqrt.f32 %v1584_v56 }
 0x8a5   : > { %v2599_v11 = vpop.eup %2598 }
 0x8a6   : > { %v1587_v12 = vmul.f32 %v2599_v11, %v1571_v49  ;;  %v1815_v11 = vmul.u32 (!%p2159_p5), 8, %v2805_v32 }
 0x8a8   : > { %v1593_v14 = vmul.f32 %v1592_v10, %v1587_v12 }
 0x8a9   : > { %v2601_v15 = vpop.eup %2600 }
 0x8aa   : > { %v1588_v16 = vmul.f32 %v2601_v15, %v1572_v48  ;;  %v1599_v17 = vadd.f32 %v1598_v13, %v1593_v14  ;;  %v2663_v14 = vmov (!%p2159_p5), 0.0  }
 0x8ac   : > { %v1594_v19 = vmul.f32 %v1592_v10, %v1588_v16  ;;  %2333 = vmatprep.mubr.msk.f32.mxu1 %vm507_vm1, %v1599_v17  ;;  %v1814_v10 = vld [vmem:[%s3036_s0] sm:$0x3] (!%p2159_p5) }
 0x8ae   : > { %v1600_v20 = vadd.f32 %v1598_v13, %v1594_v19  ;;  %v2661_v13 = vmov (!%p2159_p5), 0.0|0.0  }
 0x8af   : > { %2485 = vmatprep.subr.bf16.mxu0 (!%p2159_p5), %v2661_v13  ;;  %2488 = vmatprep.subr.bf16.mxu1 (!%p2159_p5), %v2661_v13 }
 0x8b0   : > { %2334 = vmatmul.mubr.msk.f32.vlgmr.msra.gmra.mrb[14].mxu1 %vm507_vm1, %v1600_v20 }
 0x8b1   : > { %2386 = vmatprep.mubr.msk.f32.mxu1 (!%p2159_p5), %vm2662_vm10, %v2663_v14 }
 0x983   : > { %v2335_v46 = vpop.f32.mrb[14].mxu1 }
 0x984   : > { %v1690_v47 = vadd.f32 %v2335_v46, %v2154_v45  ;;  %v1684_v7 = vpop.f32.mrb[15].mxu1 }
 0x985   : > { %v1685_v6 = vadd.f32 %v2154_v45, %v1684_v7 }
 0x986   : > { %v2158_v48 = vmul.f32 -1.702, %v1690_v47 }
 0x987   : > { %v2157_v49 = vmul.f32 -1.702, %v1685_v6 }
 0x988   : > { %v1699_v50 = vmul.f32 1.442695, %v2158_v48 }
 0x989   : > { %v1697_v51 = vmul.f32 1.442695, %v2157_v49 }
 0x98a   : > { %2602 = vpow2.f32 %v1699_v50 }
 0x98b   : > { %2604 = vpow2.f32 %v1697_v51 }
 0x994   : > { %v2603_v53 = vpop.eup %2602 }
 0x995   : > { %v2605_v54 = vpop.eup %2604  ;;  %v1702_v57 = vadd.f32 1.0, %v2603_v53 }
 0x996   : > { %v1701_v58 = vadd.f32 1.0, %v2605_v54 }
 0x997   : > { %2606 = vrcp.f32 %v1702_v57 }
 0x998   : > { %2608 = vrcp.f32 %v1701_v58 }
 0x9a1   : > { %v2607_v60 = vpop.eup %2606 }
 0x9a2   : > { %v2609_v61 = vpop.eup %2608  ;;  %v1708_v63 = vmul.f32 %v2607_v60, %v1690_v47 }
 0x9a3   : > { %v1707_v62 = vmul.f32 %v2609_v61, %v1685_v6 }
 0x9a5   : > { %2368 = vmatprep.mubr.f32.mxu0 %v1707_v62 }
 0x9a6   : > { %2369 = vmatmul.mubr.f32.vlgmr.msra.gmra.mrb[6].mxu0 %v1708_v63 }
 0x9a7   : > { %2375 = vmatprep.mubr.msk.f32.mxu0 (!%p2159_p5), %vm2662_vm10, %v2663_v14 }
 0xa79   : > { %v2370_v3 = vpop.f32.mrb[6].mxu0  ;;  %1813 = sbr.rel (%p2159_p5) target bundleno = 3553 (0xde1), region = 72 }
 0xa7a   : > { %v1801_v4 = vadd.f32 %v2370_v3, %v2937_v42  ;;  %v1791_v5 = vpop.f32.mrb[7].mxu0  ;;  %v2660_v42 = vmov (!%p2159_p5), 0  }
 0xa7b   : > { %v1800_v56 = vadd.f32 %v1791_v5, %v2939_v43  ;;  %2610 = vset.pattern.permute.xlu0 (!%p2159_p5), %v2660_v42  ;;  %v1816_v43 = vadd.s32 (!%p2159_p5), %v1815_v11, %v1814_v10 }
 0xa7c   : > { %v1807_v8 = vadd.f32 %v1805_v1, %v1801_v4 }
 0xa7d   : > { %v1806_v9 = vadd.f32 %v1805_v1, %v1800_v56  ;;  %1818 = vperm.xlu0 (!%p2159_p5), %2610, %v1816_v43  }
 0xa7e   : > { %1809 = vst.msk [vmem:[#allocation2 + $0x8] sm:$0xff] %vm507_vm1, %v1807_v8 }
 0xa7f   : > { %1808 = vst.msk [vmem:[#allocation2] sm:$0xff] %vm507_vm1, %v1806_v9  ;;  %v2486_v12 = vpack.c.bf16 (!%p2159_p5), %v1807_v8, %v1806_v9 }
 0xa81   : > { %2487 = vmatpush3.bf16.msra.mxu0 %v2486_v12 }
 0xafc   : > { %v1819_v15 = vpop.permute.xlu0 %1818 }
 0xafd   : > { %vm1820_vm11 = vcmp.eq.s32.totalorder %v2865_v18, %v1819_v15  ;;  %v1921_v18 = vld [vmem:[%s3046_s10 + $0x8] sm:$0xff] }
 0xafe   : > { %v2160_v16 = vsel %vm1820_vm11, 1.0, %v2663_v14  ;;  %v2489_v28 = vpack.c.bf16 %v1921_v18, %v1920_v26 }
 0xaff   : > { %2376 = vmatmul.mubr.msk.f32.vlgmr.msra.gmra.mrb[0].mxu0 %vm1002_vm8, %v2160_v16 }
 0xb00   : > { %2490 = vmatpush3.bf16.msra.mxu1 %v2489_v28 }
 0xb01   : > { %2491 = vmatprep.subr.bf16.mxu1 %v2661_v13 }
 0xb04   : > { %2493 = vmatpush3.bf16.msra.mxu1 %v2492_v30 }
 0xbd2   : > { %v1892_v17 = vpop.f32.mrb[0].mxu0 }
 0xbd3   : > { %v2377_v19 = vpop.f32.mrb[1].mxu0  ;;  %v1897_v20 = vsel %vm1896_vm12, %v1892_v17, 0.0 }
 0xbd4   : > { %1898 = vadd.xlane.f32.xlu0 %v1897_v20 }
 0xc61   : > { %v1899_v21 = vpop.xlane.xlu0 %1898 }
 0xc62   : > { %v1900_v22 = vmul.f32 0.03125, %v1899_v21 }
 0xc64   : > { %v1901_v23 = vsub.f32 %v1892_v17, %v1900_v22 }
 0xc66   : > { %v1902_v24 = vmul.f32 %v1901_v23, %v1901_v23 }
 0xc68   : > { %v1903_v25 = vsel %vm1896_vm12, %v1902_v24, 0.0 }
 0xc69   : > { %1904 = vadd.xlane.f32.xlu1 %v1903_v25 }
 0xcf6   : > { %v1905_v31 = vpop.xlane.xlu1 %1904 }
 0xcf7   : > { %v1906_v33 = vmul.f32 0.03125, %v1905_v31 }
 0xcf9   : > { %v1907_v34 = vadd.f32 1e-05, %v1906_v33 }
 0xcfb   : > { %2611 = vrsqrt.f32 %v1907_v34 }
 0xd05   : > { %v2612_v39 = vpop.eup %2611 }
 0xd06   : > { %v1909_v40 = vmul.f32 %v2612_v39, %v1901_v23 }
 0xd08   : > { %v1914_v41 = vmul.f32 %v1913_v38, %v1909_v40 }
 0xd0a   : > { %v1919_v52 = vadd.f32 %v1918_v55, %v1914_v41 }
 0xd0c   : > { %2387 = vmatmul.mubr.msk.f32.vlgmr.msra.gmra.mrb[0].mxu1 %vm507_vm1, %v1919_v52 }
 0xddf   : > { %v1993_v59 = vpop.f32.mrb[0].mxu1 }
 0xde0   : > { %1998 = vst.msk [vmem:[#allocation3] sm:$0x3] %vm1997_vm13, %v1993_v59  ;;  %v2388_v2 = vpop.f32.mrb[1].mxu1 }
 0xde1 PF: > { %p2498_p6 = scmp.eq.s32.totalorder %s2731_s18, 1  ;;  %s2664_s20 = smov [#allocation3]  }
 0xde2   : > { %s2006_s30 = sshll.u32 %s2664_s20, 4  ;;  %s2007_s30 = int_to_ptr.vmem [resolvable:$true] %s2006_s30 }
 0xde3   : > { %s2613_s12 = scalar_lea.vmem %s2007_s30, 32  ;;  %p2620_p10 = scmp.lt.s32.totalorder %s2007_s30, %s2007_s30 }
 0xde4   : > { %p2614_p7 = scmp.ne.s32.totalorder %s2007_s30, %s2613_s12  ;;  %p2621_p11 = scmp.lt.s32.totalorder %s2613_s12, %s2613_s12 }
 0xde6   : > { %p2615_p8 = pnand %p2614_p7, %p2498_p6  ;;  %p2622_p12 = por %p2621_p11, %p2620_p10 }
 0xde8   : > { %p2616_p9 = pneg %p2615_p8 }
 0xdea   : > { %p2623_p13 = pnand %p2622_p12, %p2616_p9 }
 0xdec   : > { %2626 = shalt.err (!%p2623_p13)
}
 0xded   : > { %s2627_s15 = scalar_lea.hbm %s3047_s11, 32 }
 0xdee   : > { %p2628_p0 = scmp.ne.s32.totalorder %s3047_s11, %s2627_s15  ;;  %p2633_p3 = scmp.lt.u32.totalorder %s2627_s15, %s3047_s11 }
 0xdf0   : > { %p2629_p1 = pnand %p2628_p0, %p2498_p6 }
 0xdf2   : > { %p2630_p2 = pneg %p2629_p1 }
 0xdf4   : > { %p2635_p4 = pnand %p2633_p3, %p2630_p2 }
 0xdf6   : > { %2638 = shalt.err (!%p2635_p4)
}
 0xdf7   : > { %2495 = dma.vmem_to_hbm [thread:$0]  (%p2498_p6), %s2007_s30, 32, %s3047_s11, [#allocation4]  }
 0xdf8   : > { %2644 = dma.done.wait (%p2498_p6), [#allocation4], 32  }
 0xdf9   : > { %2646 = vsyncadd (%p2498_p6), [#allocation4], 4294967264 }
 0xdfa PF: > { %s22_s17 = sadd.s32 1, %s2649_s17  }
 0xdfb   : > { %p19_p5 = scmp.ge.s32.totalorder %s22_s17, 4  }
 0xdfd   :  { %21 = sbr.rel (!%p19_p5) target bundleno = 3 (0x3), region = 117 }
 0xe04   :  { %2019 = vsyncpa [#allocation4], 1 }
 0xe05   :  { %2021 = vsyncpa [#allocation4 + $0x1], 1 }

</bundles_post_ra>
